<compile_context>
chip_gen: v7x
topology: tpu7x:2x2x1
jax: 0.10.0
libtpu: 0.0.40
codegen_flags: <defaults>
</compile_context>

<pallas_src>
import jax
import jax.numpy as jnp
from jax.experimental import pallas as pl
from jax.experimental.pallas import tpu as pltpu


def _fused_convt_kernel(p1_ref, w1_ref, b0_ref, w2_ref, b1_ref, o_ref):
    # Stage 1: ConvTranspose2d(16,16,5,s=2) + ReLU as one im2col matmul.
    #   p1_ref: (361, 400) im2col patches of the dilated/padded input
    #   w1_ref: (400, 16)  flipped/transposed conv weight
    v3 = jnp.dot(p1_ref[...], w1_ref[...], preferred_element_type=jnp.float32)
    v3 = jnp.maximum(v3 + b0_ref[...], 0.0)                     # (361, 16) == v3[i,j,:]

    # Stage 2: max_unpool2d(2, top-left) + ConvTranspose2d(16,16,3,s=2) + ReLU,
    # phase-decomposed: v6[4i+a, 4j+b, co] = relu(v3[i,j,:] @ w1_pt[:,co,a,b] + b1)
    # for a,b in {0,1,2}; columns with a==3 or b==3 carry zero weights -> relu(bias).
    #   w2_ref: (16, 256) with column index (a*4+b)*16+co ; b1_ref: (1, 256)
    r = jnp.dot(v3, w2_ref[...], preferred_element_type=jnp.float32)
    o_ref[...] = jnp.maximum(r + b1_ref[...], 0.0)              # (361, 256), lane-dense


def _fused_convs(p1, w1mat, b0r, w2mat, b1rep):
    M, K0C = p1.shape            # (361, 400)
    N2 = w2mat.shape[1]          # 256
    return pl.pallas_call(
        _fused_convt_kernel,
        out_shape=jax.ShapeDtypeStruct((M, N2), jnp.float32),
        grid=(1,),
        in_specs=[
            pl.BlockSpec((M, K0C), lambda i: (0, 0)),            # patches, whole array
            pl.BlockSpec((K0C, w1mat.shape[1]), lambda i: (0, 0)),
            pl.BlockSpec((1, b0r.shape[1]), lambda i: (0, 0)),
            pl.BlockSpec((w2mat.shape[0], N2), lambda i: (0, 0)),
            pl.BlockSpec((1, N2), lambda i: (0, 0)),
        ],
        out_specs=pl.BlockSpec((M, N2), lambda i: (0, 0)),
        compiler_params=pltpu.CompilerParams(dimension_semantics=("arbitrary",)),
    )(p1, w1mat, b0r, w2mat, b1rep)


@jax.jit
def model_forward(x_nchw, w0, b0, w1, b1):
    f32 = jnp.float32
    # ---- input / weight prep (tiny, FLOP-free; input & params only) ----
    x = jnp.transpose(x_nchw[0], (1, 2, 0)).astype(f32)          # (8, 8, 16) HWC
    H, _, Cin = x.shape                                          # 8, 8, 16
    K0, Cout0 = w0.shape[2], w0.shape[1]                         # 5, 16
    K1, Cout1 = w1.shape[2], w1.shape[1]                         # 3, 16
    s = 2

    # conv #1 as a regular conv of the zero-dilated, (K0-1)-padded input with the
    # spatially flipped / channel-transposed weight; build the im2col slab in XLA.
    Hd = (H - 1) * s + 1                                         # 15
    xd = jnp.zeros((Hd, Hd, Cin), f32).at[::s, ::s, :].set(x)
    xp = jnp.pad(xd, ((K0 - 1, K0 - 1), (K0 - 1, K0 - 1), (0, 0)))   # (23, 23, 16)
    Ho = Hd + K0 - 1                                             # 19
    patches = jnp.concatenate(
        [xp[kh:kh + Ho, kw:kw + Ho, :] for kh in range(K0) for kw in range(K0)],
        axis=-1)                                                 # (19, 19, 400)
    p1 = patches.reshape(Ho * Ho, K0 * K0 * Cin)                 # (361, 400)
    w1mat = jnp.transpose(w0[:, :, ::-1, ::-1].astype(f32),
                          (2, 3, 0, 1)).reshape(K0 * K0 * Cin, Cout0)    # (400, 16)
    b0r = b0.reshape(1, Cout0).astype(f32)

    # conv #2 phase-decomposed weight: W2[ci, (a*4+b)*16+co] = w1_pt[ci,co,a,b] for
    # a,b<3, zero otherwise (bias-only taps).  Bias replicated per (a,b) tap.
    w2p = jnp.pad(w1.astype(f32), ((0, 0), (0, 0), (0, 1), (0, 1)))      # (16,16,4,4)
    w2mat = jnp.transpose(w2p, (0, 2, 3, 1)).reshape(Cout0, 16 * Cout1)  # (16, 256)
    b1rep = jnp.tile(b1.astype(f32), 16).reshape(1, 16 * Cout1)          # (1, 256)

    # ---- fused Pallas kernel: both ConvT stages + ReLUs (+ the intermediate unpool) ----
    r = _fused_convs(p1, w1mat, b0r, w2mat, b1rep)               # (361, 256)

    # ---- FLOP-free epilogue in XLA: reassemble v6, unfold(k=2), final unpool ----
    relu_b1 = jnp.maximum(b1.astype(f32), 0.0)                   # (16,)
    r5 = r.reshape(Ho, Ho, 4, 4, Cout1)                          # [i, j, a, b, co]
    v6_core = jnp.transpose(r5, (0, 2, 1, 3, 4)).reshape(4 * Ho, 4 * Ho, Cout1)  # (76,76,16)
    v6 = jnp.concatenate(
        [v6_core, jnp.broadcast_to(relu_b1, (1, 4 * Ho, Cout1))], axis=0)        # (77,76,16)
    v6 = jnp.concatenate(
        [v6, jnp.broadcast_to(relu_b1, (4 * Ho + 1, 1, Cout1))], axis=1)         # (77,77,16)

    Wo = 4 * Ho                                                  # 76 = unfold output size
    parts = jnp.stack(
        [v6[kh:kh + Wo, kw:kw + Wo, :] for kh in (0, 1) for kw in (0, 1)], axis=0)  # (4,76,76,16)
    v7 = jnp.transpose(parts, (3, 0, 1, 2)).reshape(1, 4 * Cout1, Wo * Wo)          # (1,64,5776)

    # TODO(synk): final MaxUnpool2d(2) also lacks real indices; deterministic top-left.
    v8 = jnp.zeros((1, 8 * Cout1, 2 * Wo * Wo), f32).at[:, ::2, ::2].set(v7)        # (1,128,11552)
    return v8


if __name__ == "__main__":
    key = jax.random.PRNGKey(0)
    k1, k2, k3, k4, k5 = jax.random.split(key, 5)
    # Input matching the module: x1 = torch.randn(1, 16, 8, 8)  (NCHW)
    x1 = jax.random.normal(k1, (1, 16, 8, 8), dtype=jnp.float32)
    # PyTorch ConvTranspose2d weight layout: (Cin, Cout, K, K)
    w_conv = 0.05 * jax.random.normal(k2, (16, 16, 5, 5), dtype=jnp.float32)
    b_conv = 0.05 * jax.random.normal(k3, (16,), dtype=jnp.float32)
    w_conv1 = 0.05 * jax.random.normal(k4, (16, 16, 3, 3), dtype=jnp.float32)
    b_conv1 = 0.05 * jax.random.normal(k5, (16,), dtype=jnp.float32)

    out = model_forward(x1, w_conv, b_conv, w_conv1, b_conv1)
    jax.block_until_ready(out)
    assert out.shape == (1, 128, 11552), out.shape
    print("KERNEL_OK")
</pallas_src>

<mosaic_0001>
module attributes {stable_mosaic.version = 11 : i64} {
  func.func @_fused_convt_kernel(%arg0: i32, %arg1: memref<361x400xf32, #tpu.memory_space<vmem>>, %arg2: memref<400x16xf32, #tpu.memory_space<vmem>>, %arg3: memref<1x16xf32, #tpu.memory_space<vmem>>, %arg4: memref<16x256xf32, #tpu.memory_space<vmem>>, %arg5: memref<1x256xf32, #tpu.memory_space<vmem>>, %arg6: memref<361x256xf32, #tpu.memory_space<vmem>>) attributes {dimension_semantics = [#tpu.dimension_semantics<arbitrary>], iteration_bounds = array<i64: 1>, scalar_prefetch = 0 : i64, scratch_operands = 0 : i64, tpu.core_type = #tpu.core_type<tc>, window_params = [{pipeline_mode = #tpu.pipeline_mode<synchronous>, transform_indices = @transform_0, window_bounds = array<i64: 361, 400>}, {pipeline_mode = #tpu.pipeline_mode<synchronous>, transform_indices = @transform_1, window_bounds = array<i64: 400, 16>}, {pipeline_mode = #tpu.pipeline_mode<synchronous>, transform_indices = @transform_2, window_bounds = array<i64: 1, 16>}, {pipeline_mode = #tpu.pipeline_mode<synchronous>, transform_indices = @transform_3, window_bounds = array<i64: 16, 256>}, {pipeline_mode = #tpu.pipeline_mode<synchronous>, transform_indices = @transform_4, window_bounds = array<i64: 1, 256>}, {pipeline_mode = #tpu.pipeline_mode<synchronous>, transform_indices = @transform_5, window_bounds = array<i64: 361, 256>}]} {
    %c0 = arith.constant 0 : index
    %c0_0 = arith.constant 0 : index
    %0 = vector.load %arg1[%c0, %c0_0] : memref<361x400xf32, #tpu.memory_space<vmem>>, vector<361x400xf32>
    %c0_1 = arith.constant 0 : index
    %c0_2 = arith.constant 0 : index
    %1 = vector.load %arg2[%c0_1, %c0_2] : memref<400x16xf32, #tpu.memory_space<vmem>>, vector<400x16xf32>
    %cst = arith.constant dense<0.000000e+00> : vector<361x16xf32>
    %2 = tpu.matmul %0, %1, %cst {dimension_numbers = #tpu.dot_dimension_numbers<[1], [0], [0], [1], [0, 0, 1, 1], [], []>} : vector<361x400xf32>, vector<400x16xf32>, vector<361x16xf32> -> vector<361x16xf32>
    %c0_3 = arith.constant 0 : index
    %c0_4 = arith.constant 0 : index
    %3 = vector.load %arg3[%c0_3, %c0_4] : memref<1x16xf32, #tpu.memory_space<vmem>>, vector<1x16xf32>
    %4 = vector.broadcast %3 : vector<1x16xf32> to vector<361x16xf32>
    %5 = arith.addf %2, %4 : vector<361x16xf32>
    %cst_5 = arith.constant 0.000000e+00 : f32
    %6 = vector.broadcast %cst_5 : f32 to vector<361x16xf32>
    %7 = arith.maximumf %5, %6 : vector<361x16xf32>
    %c0_6 = arith.constant 0 : index
    %c0_7 = arith.constant 0 : index
    %8 = vector.load %arg4[%c0_6, %c0_7] : memref<16x256xf32, #tpu.memory_space<vmem>>, vector<16x256xf32>
    %cst_8 = arith.constant dense<0.000000e+00> : vector<361x256xf32>
    %9 = tpu.matmul %7, %8, %cst_8 {dimension_numbers = #tpu.dot_dimension_numbers<[1], [0], [0], [1], [0, 0, 1, 1], [], []>} : vector<361x16xf32>, vector<16x256xf32>, vector<361x256xf32> -> vector<361x256xf32>
    %c0_9 = arith.constant 0 : index
    %c0_10 = arith.constant 0 : index
    %10 = vector.load %arg5[%c0_9, %c0_10] : memref<1x256xf32, #tpu.memory_space<vmem>>, vector<1x256xf32>
    %11 = vector.broadcast %10 : vector<1x256xf32> to vector<361x256xf32>
    %12 = arith.addf %9, %11 : vector<361x256xf32>
    %cst_11 = arith.constant 0.000000e+00 : f32
    %13 = vector.broadcast %cst_11 : f32 to vector<361x256xf32>
    %14 = arith.maximumf %12, %13 : vector<361x256xf32>
    %c0_12 = arith.constant 0 : index
    %c0_13 = arith.constant 0 : index
    %15 = vector.load %arg6[%c0_12, %c0_13] : memref<361x256xf32, #tpu.memory_space<vmem>>, vector<361x256xf32>
    tpu.vector_store %arg6[%c0_12, %c0_13], %14 {strides = array<i32>} : memref<361x256xf32, #tpu.memory_space<vmem>>, vector<361x256xf32>,
    return
  }
  func.func @transform_0(%arg0: i32) -> (i32, i32) {
    %c0_i32 = arith.constant 0 : i32
    %c0_i32_0 = arith.constant 0 : i32
    %c0_i32_1 = arith.constant 0 : i32
    return %c0_i32, %c0_i32_0 : i32, i32
  }
  func.func @transform_1(%arg0: i32) -> (i32, i32) {
    %c0_i32 = arith.constant 0 : i32
    %c0_i32_0 = arith.constant 0 : i32
    %c0_i32_1 = arith.constant 0 : i32
    return %c0_i32, %c0_i32_0 : i32, i32
  }
  func.func @transform_2(%arg0: i32) -> (i32, i32) {
    %c0_i32 = arith.constant 0 : i32
    %c0_i32_0 = arith.constant 0 : i32
    %c0_i32_1 = arith.constant 0 : i32
    return %c0_i32, %c0_i32_0 : i32, i32
  }
  func.func @transform_3(%arg0: i32) -> (i32, i32) {
    %c0_i32 = arith.constant 0 : i32
    %c0_i32_0 = arith.constant 0 : i32
    %c0_i32_1 = arith.constant 0 : i32
    return %c0_i32, %c0_i32_0 : i32, i32
  }
  func.func @transform_4(%arg0: i32) -> (i32, i32) {
    %c0_i32 = arith.constant 0 : i32
    %c0_i32_0 = arith.constant 0 : i32
    %c0_i32_1 = arith.constant 0 : i32
    return %c0_i32, %c0_i32_0 : i32, i32
  }
  func.func @transform_5(%arg0: i32) -> (i32, i32) {
    %c0_i32 = arith.constant 0 : i32
    %c0_i32_0 = arith.constant 0 : i32
    %c0_i32_1 = arith.constant 0 : i32
    return %c0_i32, %c0_i32_0 : i32, i32
  }
}

</mosaic_0001>

<bundles_post_ra>
// kernel: tile.8
= control target key start
LH: loop header
LB: loop body
LE: loop exit
PB: predicated region body
PF: predicated region fallthrough
CT: control target
= control target key end

     0   :  { %s28_s0 = inlined_call_operand.vmem [shape: f32[16], index: 0, kind: input, shape index: {}]   ;;  %s29_s1 = inlined_call_operand.vmem [shape: f32[16,16], index: 1, kind: output, shape index: {}]  }
   0x1   :  { %v4_v0 = vld [vmem:[%s28_s0] ss:$0 sm:$0xff] }
   0x2   :  { %5 = vst [vmem:[%s29_s1] sm:$0xff] %v4_v0  ;;  %8 = vst [vmem:[%s29_s1 + $0x8] sm:$0xff] %v4_v0 }

// kernel: tile.9
= control target key start
LH: loop header
LB: loop body
LE: loop exit
PB: predicated region body
PF: predicated region fallthrough
CT: control target
= control target key end

     0   :  { %s7_s6 = smov 3  ;;  %s21_s9 = smov 3  ;;  %vm4_vm0 = vcmask 130048   ;;  %vm11_vm1 = vcmask 1048448   ;;  %vm18_vm2 = vcmask 917248   ;;  %vm25_vm3 = vcmask 786048   ;;  %s128_s0 = inlined_call_operand.vmem [shape: f32[16,16], index: 0, kind: input, shape index: {}]   ;;  %s129_s1 = inlined_call_operand.vmem [shape: f32[1,256], index: 1, kind: output, shape index: {}]  }
   0x1   :  { %v66_v0 = vld [vmem:[%s128_s0 + $0x7] ss:$8 sm:%s7_s6]   ;;  %s81_s10 = smov 112   ;;  %v68_v1 = vld [vmem:[%s128_s0 + $0x5] ss:$8 sm:%s21_s9]   ;;  %s14_s13 = smov 3 }
   0x2   :  { %9 = vrot.lane.b32.xlu0 %v66_v0, %s81_s10  ;;  %s82_s14 = smov 80   ;;  %v67_v2 = vld [vmem:[%s128_s0 + $0x6] ss:$8 sm:%s14_s13]   ;;  %s28_s17 = smov 3  ;;  %vm32_vm4 = vcmask 654848   ;;  %vm39_vm5 = vcmask 523648  }
   0x3   :  { %23 = vrot.lane.b32.xlu1 %v68_v1, %s82_s14  ;;  %v69_v3 = vld [vmem:[%s128_s0 + $0x4] ss:$8 sm:%s28_s17]   ;;  %s35_s20 = smov 3  ;;  %s42_s21 = smov 3  ;;  %vm46_vm6 = vcmask 392448   ;;  %vm53_vm7 = vcmask 261248  }
   0x4   :  { %s83_s22 = smov 96   ;;  %s84_s23 = smov 64   ;;  %v70_v4 = vld [vmem:[%s128_s0 + $0x3] ss:$8 sm:%s35_s20]   ;;  %v71_v5 = vld [vmem:[%s128_s0 + $0x2] ss:$8 sm:%s42_s21]  }
   0x5   :  { %s2_s26 = smov 3  ;;  %s49_s29 = smov 3 }
   0x6   :  { %16 = vrot.lane.b32.xlu0 %v67_v2, %s83_s22  ;;  %v3_v6 = vld [vmem:[%s128_s0] ss:$8 sm:%s2_s26]   ;;  %s85_s3 = smov 48   ;;  %s86_s4 = smov 32  }
   0x7   :  { %30 = vrot.lane.b32.xlu1 %v69_v3, %s84_s23  ;;  %5 = vst.msk [vmem:[#allocation0] ss:$8 sm:$0x3] %vm4_vm0, %v3_v6   ;;  %v72_v7 = vld [vmem:[%s128_s0 + $0x1] ss:$8 sm:%s49_s29]   ;;  %s87_s0 = smov 16  }
   0xa   :  { %37 = vrot.lane.b32.xlu0 %v70_v4, %s85_s3 }
   0xb   :  { %44 = vrot.lane.b32.xlu1 %v71_v5, %s86_s4 }
   0xe   :  { %51 = vrot.lane.b32.xlu0 %v72_v7, %s87_s0 }
  0x74   :  { %v10_v8 = vpop.permute.xlu0 %9  }
  0x75   :  { %12 = vst.msk [vmem:[#allocation0] ss:$8 sm:$0x3] %vm11_vm1, %v10_v8   ;;  %v24_v9 = vpop.permute.xlu1 %23  }
  0x78   :  { %v17_v10 = vpop.permute.xlu0 %16  }
  0x79   :  { %19 = vst.msk [vmem:[#allocation0] ss:$8 sm:$0x3] %vm18_vm2, %v17_v10   ;;  %v31_v11 = vpop.permute.xlu1 %30  }
  0x7a   :  { %26 = vst.msk [vmem:[#allocation0] ss:$8 sm:$0x3] %vm25_vm3, %v24_v9  }
  0x7b   :  { %33 = vst.msk [vmem:[#allocation0] ss:$8 sm:$0x3] %vm32_vm4, %v31_v11  }
  0x7c   :  { %v38_v12 = vpop.permute.xlu0 %37  }
  0x7d   :  { %40 = vst.msk [vmem:[#allocation0] ss:$8 sm:$0x3] %vm39_vm5, %v38_v12   ;;  %v45_v13 = vpop.permute.xlu1 %44  }
  0x7e   :  { %47 = vst.msk [vmem:[#allocation0] ss:$8 sm:$0x3] %vm46_vm6, %v45_v13  }
  0x80   :  { %v52_v14 = vpop.permute.xlu0 %51  }
  0x81   :  { %54 = vst.msk [vmem:[#allocation0] ss:$8 sm:$0x3] %vm53_vm7, %v52_v14  }
  0x88   :  { %v58_v15 = vld [vmem:[#allocation0] sm:$0x1]  ;;  %v62_v16 = vld [vmem:[#allocation0 + $0x8] sm:$0x1] }
  0x89   :  { %60 = vst [vmem:[%s129_s1] sm:$0x1] %v58_v15  ;;  %73 = vst [vmem:[%s129_s1 + $0x1] sm:$0x1] %v62_v16 }

// kernel: model_forward.1
= control target key start
LH: loop header
LB: loop body
LE: loop exit
PB: predicated region body
PF: predicated region fallthrough
CT: control target
= control target key end

     0   :  { %v2023_v0 = vmov 0.0|0.0   ;;  %vm261_vm0 = vcmask 130048   ;;  %s3559_s1 = inlined_call_operand.vmem [shape: f32[400,16], index: 1, kind: input, shape index: {}]   ;;  %s3560_s0 = inlined_call_operand.vmem [shape: f32[361,400], index: 0, kind: input, shape index: {}]   ;;  %s3561_s3 = inlined_call_operand.vmem [shape: f32[16,256], index: 3, kind: input, shape index: {}]   ;;  %s3562_s2 = inlined_call_operand.vmem [shape: f32[1,16], index: 2, kind: input, shape index: {}]   ;;  %s3563_s4 = inlined_call_operand.vmem [shape: f32[1,256], index: 4, kind: input, shape index: {}]   ;;  %s3564_s5 = inlined_call_operand.vmem [shape: f32[361,256], index: 5, kind: output, shape index: {}]  }
   0x1   :  { %1812 = vmatprep.subr.bf16.mxu0 %v2023_v0  ;;  %v204_v1 = vld [vmem:[%s3559_s1] sm:$0xff]  ;;  %v205_v2 = vld [vmem:[%s3559_s1 + $0x8] sm:$0xff]  ;;  %v206_v3 = vld [vmem:[%s3559_s1 + $0x10] sm:$0xff]  ;;  %1891 = vmatprep.subr.bf16.mxu1 %v2023_v0 }
   0x2   :  { %v1813_v4 = vpack.c.bf16 %v205_v2, %v204_v1  ;;  %v207_v5 = vld [vmem:[%s3559_s1 + $0x18] sm:$0xff]  ;;  %v208_v7 = vld [vmem:[%s3559_s1 + $0x20] sm:$0xff]  ;;  %v209_v8 = vld [vmem:[%s3559_s1 + $0x28] sm:$0xff] }
   0x3   :  { %v1816_v6 = vpack.c.bf16 %v207_v5, %v206_v3  ;;  %v1819_v9 = vpack.c.bf16 %v209_v8, %v208_v7  ;;  %v210_v10 = vld [vmem:[%s3559_s1 + $0x30] sm:$0xff]  ;;  %v211_v11 = vld [vmem:[%s3559_s1 + $0x38] sm:$0xff]  ;;  %v21_v12 = vld [vmem:[%s3560_s0 + $0x8] sm:$0xff] }
   0x4   :  { %1814 = vmatpush1.bf16.msra.mxu0 %v1813_v4  ;;  %v1822_v13 = vpack.c.bf16 %v211_v11, %v210_v10  ;;  %464 = vmatprep.mubr.f32.mxu0 %v21_v12  ;;  %v236_v14 = vld [vmem:[%s3559_s1 + $0x100] sm:$0xff]  ;;  %v237_v15 = vld [vmem:[%s3559_s1 + $0x108] sm:$0xff]  ;;  %v238_v20 = vld [vmem:[%s3559_s1 + $0x110] sm:$0xff] }
   0x5   :  { %1815 = vmatprep.subr.bf16.mxu0 %v2023_v0  ;;  %v212_v16 = vld [vmem:[%s3559_s1 + $0x40] sm:$0xff]  ;;  %v213_v17 = vld [vmem:[%s3559_s1 + $0x48] sm:$0xff]  ;;  %v2099_v18 = vpack.c.bf16 %v237_v15, %v236_v14  ;;  %v239_v21 = vld [vmem:[%s3559_s1 + $0x118] sm:$0xff] }
   0x6   :  { %v1825_v19 = vpack.c.bf16 %v213_v17, %v212_v16  ;;  %v214_v22 = vld [vmem:[%s3559_s1 + $0x50] sm:$0xff]  ;;  %v215_v23 = vld [vmem:[%s3559_s1 + $0x58] sm:$0xff]  ;;  %v2116_v24 = vpack.c.bf16 %v239_v21, %v238_v20  ;;  %v240_v26 = vld [vmem:[%s3559_s1 + $0x120] sm:$0xff] }
   0x7   :  { %1900 = vmatpush1.bf16.msra.mxu1 %v2099_v18  ;;  %v1828_v25 = vpack.c.bf16 %v215_v23, %v214_v22  ;;  %v241_v27 = vld [vmem:[%s3559_s1 + $0x128] sm:$0xff]  ;;  %v216_v28 = vld [vmem:[%s3559_s1 + $0x60] sm:$0xff]  ;;  %v242_v32 = vld [vmem:[%s3559_s1 + $0x130] sm:$0xff] }
   0x8   :  { %1817 = vmatpush1.bf16.msra.mxu0 %v1816_v6  ;;  %1892 = vmatprep.subr.bf16.mxu1 %v2023_v0  ;;  %v217_v29 = vld [vmem:[%s3559_s1 + $0x68] sm:$0xff]  ;;  %v2133_v30 = vpack.c.bf16 %v241_v27, %v240_v26  ;;  %v243_v33 = vld [vmem:[%s3559_s1 + $0x138] sm:$0xff]  ;;  %v218_v34 = vld [vmem:[%s3559_s1 + $0x70] sm:$0xff] }
   0x9   :  { %1818 = vmatprep.subr.bf16.mxu0 %v2023_v0  ;;  %v1831_v31 = vpack.c.bf16 %v217_v29, %v216_v28  ;;  %v219_v35 = vld [vmem:[%s3559_s1 + $0x78] sm:$0xff]  ;;  %v2150_v36 = vpack.c.bf16 %v243_v33, %v242_v32  ;;  %v244_v37 = vld [vmem:[%s3559_s1 + $0x140] sm:$0xff]  ;;  %v245_v38 = vld [vmem:[%s3559_s1 + $0x148] sm:$0xff] }
   0xa   :  { %v2159_v39 = vpack.c.bf16 %v245_v38, %v244_v37  ;;  %v1834_v40 = vpack.c.bf16 %v219_v35, %v218_v34  ;;  %v246_v41 = vld [vmem:[%s3559_s1 + $0x150] sm:$0xff]  ;;  %v247_v42 = vld [vmem:[%s3559_s1 + $0x158] sm:$0xff]  ;;  %v220_v43 = vld [vmem:[%s3559_s1 + $0x80] sm:$0xff] }
   0xb   :  { %1901 = vmatpush1.bf16.msra.mxu1 %v2116_v24  ;;  %v221_v44 = vld [vmem:[%s3559_s1 + $0x88] sm:$0xff]  ;;  %v2176_v45 = vpack.c.bf16 %v247_v42, %v246_v41  ;;  %v103_v46 = vld [vmem:[%s3560_s0 + $0x298] sm:$0xff]  ;;  %v248_v48 = vld [vmem:[%s3559_s1 + $0x160] sm:$0xff] }
   0xc   :  { %1820 = vmatpush1.bf16.msra.mxu0 %v1819_v9  ;;  %1893 = vmatprep.subr.bf16.mxu1 %v2023_v0  ;;  %v1837_v47 = vpack.c.bf16 %v221_v44, %v220_v43  ;;  %v249_v49 = vld [vmem:[%s3559_s1 + $0x168] sm:$0xff]  ;;  %v222_v50 = vld [vmem:[%s3559_s1 + $0x90] sm:$0xff]  ;;  %v223_v51 = vld [vmem:[%s3559_s1 + $0x98] sm:$0xff] }
   0xd   :  { %1821 = vmatprep.subr.bf16.mxu0 %v2023_v0  ;;  %1740 = vmatprep.mubr.msk.f32.mxu1 %vm261_vm0, %v103_v46  ;;  %v2197_v52 = vpack.c.bf16 %v249_v49, %v248_v48  ;;  %v1840_v53 = vpack.c.bf16 %v223_v51, %v222_v50  ;;  %v250_v54 = vld [vmem:[%s3559_s1 + $0x170] sm:$0xff]  ;;  %v251_v55 = vld [vmem:[%s3559_s1 + $0x178] sm:$0xff]  ;;  %v224_v56 = vld [vmem:[%s3559_s1 + $0xa0] sm:$0xff] }
   0xe   :  { %v225_v57 = vld [vmem:[%s3559_s1 + $0xa8] sm:$0xff]  ;;  %v2214_v58 = vpack.c.bf16 %v251_v55, %v250_v54  ;;  %v252_v60 = vld [vmem:[%s3559_s1 + $0x180] sm:$0xff]  ;;  %v226_v62 = vld [vmem:[%s3559_s1 + $0xb0] sm:$0xff] }
   0xf   :  { %1902 = vmatpush1.bf16.msra.mxu1 %v2133_v30  ;;  %v1843_v59 = vpack.c.bf16 %v225_v57, %v224_v56  ;;  %v253_v61 = vld [vmem:[%s3559_s1 + $0x188] sm:$0xff]  ;;  %v227_v63 = vld [vmem:[%s3559_s1 + $0xb8] sm:$0xff]  ;;  %v228_v3 = vld [vmem:[%s3559_s1 + $0xc0] sm:$0xff] }
  0x10   :  { %1823 = vmatpush1.bf16.msra.mxu0 %v1822_v13  ;;  %1894 = vmatprep.subr.bf16.mxu1 %v2023_v0  ;;  %v2231_v1 = vpack.c.bf16 %v253_v61, %v252_v60  ;;  %v1846_v2 = vpack.c.bf16 %v227_v63, %v226_v62  ;;  %v229_v4 = vld [vmem:[%s3559_s1 + $0xc8] sm:$0xff]  ;;  %v102_v5 = vld [vmem:[%s3560_s0 + $0x290] sm:$0xff]  ;;  %v107_v7 = vld [vmem:[%s3560_s0 + $0x2b8] sm:$0xff] }
  0x11   :  { %1824 = vmatprep.subr.bf16.mxu0 %v2023_v0  ;;  %v1849_v6 = vpack.c.bf16 %v229_v4, %v228_v3  ;;  %v230_v8 = vld [vmem:[%s3559_s1 + $0xd0] sm:$0xff]  ;;  %v231_v9 = vld [vmem:[%s3559_s1 + $0xd8] sm:$0xff]  ;;  %v232_v13 = vld [vmem:[%s3559_s1 + $0xe0] sm:$0xff] }
  0x12   :  { %v106_v10 = vld [vmem:[%s3560_s0 + $0x2b0] sm:$0xff]  ;;  %v1852_v11 = vpack.c.bf16 %v231_v9, %v230_v8  ;;  %v111_v12 = vld [vmem:[%s3560_s0 + $0x2d8] sm:$0xff]  ;;  %v233_v14 = vld [vmem:[%s3559_s1 + $0xe8] sm:$0xff] }
  0x13   :  { %1903 = vmatpush1.bf16.msra.mxu1 %v2150_v36  ;;  %v110_v15 = vld [vmem:[%s3560_s0 + $0x2d0] sm:$0xff]  ;;  %v1855_v16 = vpack.c.bf16 %v233_v14, %v232_v13  ;;  %v115_v17 = vld [vmem:[%s3560_s0 + $0x2f8] sm:$0xff]  ;;  %v20_v26 = vld [vmem:[%s3560_s0] sm:$0xff] }
  0x14   :  { %1826 = vmatpush1.bf16.msra.mxu0 %v1825_v19  ;;  %1895 = vmatprep.subr.bf16.mxu1 %v2023_v0  ;;  %v234_v19 = vld [vmem:[%s3559_s1 + $0xf0] sm:$0xff]  ;;  %v235_v20 = vld [vmem:[%s3559_s1 + $0xf8] sm:$0xff]  ;;  %v25_v28 = vld [vmem:[%s3560_s0 + $0x28] sm:$0xff] }
  0x15   :  { %1827 = vmatprep.subr.bf16.mxu0 %v2023_v0  ;;  %v114_v21 = vld [vmem:[%s3560_s0 + $0x2f0] sm:$0xff]  ;;  %v1858_v22 = vpack.c.bf16 %v235_v20, %v234_v19  ;;  %v119_v23 = vld [vmem:[%s3560_s0 + $0x318] sm:$0xff]  ;;  %v29_v33 = vld [vmem:[%s3560_s0 + $0x48] sm:$0xff] }
  0x16   :  { %v123_v27 = vld [vmem:[%s3560_s0 + $0x338] sm:$0xff]  ;;  %v122_v29 = vld [vmem:[%s3560_s0 + $0x330] sm:$0xff]  ;;  %v28_v34 = vld [vmem:[%s3560_s0 + $0x40] sm:$0xff] }
  0x17   :  { %1904 = vmatpush1.bf16.msra.mxu1 %v2159_v39  ;;  %v127_v32 = vld [vmem:[%s3560_s0 + $0x358] sm:$0xff]  ;;  %v33_v37 = vld [vmem:[%s3560_s0 + $0x68] sm:$0xff]  ;;  %v130_v38 = vld [vmem:[%s3560_s0 + $0x370] sm:$0xff] }
  0x18   :  { %1829 = vmatpush1.bf16.msra.mxu0 %v1828_v25  ;;  %1896 = vmatprep.subr.bf16.mxu1 %v2023_v0  ;;  %v118_v25 = vld [vmem:[%s3560_s0 + $0x310] sm:$0xff]  ;;  %v131_v35 = vld [vmem:[%s3560_s0 + $0x378] sm:$0xff]  ;;  %v37_v41 = vld [vmem:[%s3560_s0 + $0x88] sm:$0xff] }
  0x19   :  { %1830 = vmatprep.subr.bf16.mxu0 %v2023_v0  ;;  %v134_v42 = vld [vmem:[%s3560_s0 + $0x390] sm:$0xff]  ;;  %v139_v43 = vld [vmem:[%s3560_s0 + $0x3b8] sm:$0xff]  ;;  %v41_v44 = vld [vmem:[%s3560_s0 + $0xa8] sm:$0xff] }
  0x1a   :  { %v138_v46 = vld [vmem:[%s3560_s0 + $0x3b0] sm:$0xff]  ;;  %v45_v48 = vld [vmem:[%s3560_s0 + $0xc8] sm:$0xff]  ;;  %v147_v50 = vld [vmem:[%s3560_s0 + $0x3f8] sm:$0xff] }
  0x1b   :  { %1905 = vmatpush1.bf16.msra.mxu1 %v2176_v45  ;;  %v142_v49 = vld [vmem:[%s3560_s0 + $0x3d0] sm:$0xff]  ;;  %v49_v51 = vld [vmem:[%s3560_s0 + $0xe8] sm:$0xff]  ;;  %v151_v54 = vld [vmem:[%s3560_s0 + $0x418] sm:$0xff] }
  0x1c   :  { %1832 = vmatpush1.bf16.msra.mxu0 %v1831_v31  ;;  %1897 = vmatprep.subr.bf16.mxu1 %v2023_v0  ;;  %v24_v31 = vld [vmem:[%s3560_s0 + $0x20] sm:$0xff]  ;;  %v53_v55 = vld [vmem:[%s3560_s0 + $0x108] sm:$0xff]  ;;  %v150_v56 = vld [vmem:[%s3560_s0 + $0x410] sm:$0xff] }
  0x1d   :  { %1833 = vmatprep.subr.bf16.mxu0 %v2023_v0  ;;  %v155_v57 = vld [vmem:[%s3560_s0 + $0x438] sm:$0xff]  ;;  %v154_v60 = vld [vmem:[%s3560_s0 + $0x430] sm:$0xff]  ;;  %v56_v61 = vld [vmem:[%s3560_s0 + $0x120] sm:$0xff] }
  0x1e   :  { %v158_v62 = vld [vmem:[%s3560_s0 + $0x450] sm:$0xff]  ;;  %v60_v63 = vld [vmem:[%s3560_s0 + $0x140] sm:$0xff]  ;;  %v171_v9 = vld [vmem:[%s3560_s0 + $0x4b8] sm:$0xff] }
  0x1f   :  { %1906 = vmatpush1.bf16.msra.mxu1 %v2197_v52  ;;  %v162_v3 = vld [vmem:[%s3560_s0 + $0x470] sm:$0xff]  ;;  %v64_v4 = vld [vmem:[%s3560_s0 + $0x160] sm:$0xff]  ;;  %v175_v13 = vld [vmem:[%s3560_s0 + $0x4d8] sm:$0xff] }
  0x20   :  { %1835 = vmatpush1.bf16.msra.mxu0 %v1834_v40  ;;  %1898 = vmatprep.subr.bf16.mxu1 %v2023_v0  ;;  %v135_v40 = vld [vmem:[%s3560_s0 + $0x398] sm:$0xff]  ;;  %v68_v8 = vld [vmem:[%s3560_s0 + $0x180] sm:$0xff]  ;;  %v77_v14 = vld [vmem:[%s3560_s0 + $0x1c8] sm:$0xff] }
  0x21   :  { %1836 = vmatprep.subr.bf16.mxu0 %v2023_v0  ;;  %v81_v19 = vld [vmem:[%s3560_s0 + $0x1e8] sm:$0xff]  ;;  %v178_v20 = vld [vmem:[%s3560_s0 + $0x4f0] sm:$0xff] }
  0x23   :  { %1907 = vmatpush1.bf16.msra.mxu1 %v2214_v58 }
  0x24   :  { %1838 = vmatpush1.bf16.msra.mxu0 %v1837_v47  ;;  %1899 = vmatprep.subr.bf16.mxu1 %v2023_v0  ;;  %v143_v47 = vld [vmem:[%s3560_s0 + $0x3d8] sm:$0xff] }
  0x25   :  { %1839 = vmatprep.subr.bf16.mxu0 %v2023_v0 }
  0x27   :  { %1908 = vmatpush1.bf16.msra.mxu1 %v2231_v1 }
  0x28   :  { %1841 = vmatpush1.bf16.msra.mxu0 %v1840_v53  ;;  %v146_v53 = vld [vmem:[%s3560_s0 + $0x3f0] sm:$0xff] }
  0x29   :  { %1842 = vmatprep.subr.bf16.mxu0 %v2023_v0 }
  0x2a   :  { %860 = vmatmul.mubr.f32.vlgmr.msra.gmra.mrb[0].mxu1 %v102_v5  ;;  %v167_v5 = vld [vmem:[%s3560_s0 + $0x498] sm:$0xff] }
  0x2b   :  { %1741 = vmatprep.mubr.msk.f32.mxu1 %vm261_vm0, %v107_v7  ;;  %v166_v7 = vld [vmem:[%s3560_s0 + $0x490] sm:$0xff] }
  0x2c   :  { %1844 = vmatpush1.bf16.msra.mxu0 %v1843_v59  ;;  %v57_v59 = vld [vmem:[%s3560_s0 + $0x128] sm:$0xff] }
  0x2d   :  { %1845 = vmatprep.subr.bf16.mxu0 %v2023_v0 }
  0x2e   :  { %865 = vmatmul.mubr.f32.gmra.mrb[2].mxu1 %v106_v10  ;;  %v73_v10 = vld [vmem:[%s3560_s0 + $0x1a8] sm:$0xff] }
  0x2f   :  { %1742 = vmatprep.mubr.msk.f32.mxu1 %vm261_vm0, %v111_v12  ;;  %v72_v12 = vld [vmem:[%s3560_s0 + $0x1a0] sm:$0xff] }
  0x30   :  { %1847 = vmatpush1.bf16.msra.mxu0 %v1846_v2  ;;  %v65_v2 = vld [vmem:[%s3560_s0 + $0x168] sm:$0xff] }
  0x31   :  { %1848 = vmatprep.subr.bf16.mxu0 %v2023_v0 }
  0x32   :  { %870 = vmatmul.mubr.f32.gmra.mrb[4].mxu1 %v110_v15  ;;  %v174_v15 = vld [vmem:[%s3560_s0 + $0x4d0] sm:$0xff] }
  0x33   :  { %1743 = vmatprep.mubr.msk.f32.mxu1 %vm261_vm0, %v115_v17  ;;  %v179_v17 = vld [vmem:[%s3560_s0 + $0x4f8] sm:$0xff] }
  0x34   :  { %1850 = vmatpush1.bf16.msra.mxu0 %v1849_v6  ;;  %v69_v6 = vld [vmem:[%s3560_s0 + $0x188] sm:$0xff] }
  0x35   :  { %1851 = vmatprep.subr.bf16.mxu0 %v2023_v0 }
  0x36   :  { %875 = vmatmul.mubr.f32.gmra.mrb[6].mxu1 %v114_v21  ;;  %v80_v21 = vld [vmem:[%s3560_s0 + $0x1e0] sm:$0xff] }
  0x37   :  { %1744 = vmatprep.mubr.msk.f32.mxu1 %vm261_vm0, %v119_v23  ;;  %v85_v23 = vld [vmem:[%s3560_s0 + $0x208] sm:$0xff] }
  0x38   :  { %1853 = vmatpush1.bf16.msra.mxu0 %v1852_v11  ;;  %v170_v11 = vld [vmem:[%s3560_s0 + $0x4b0] sm:$0xff] }
  0x39   :  { %1854 = vmatprep.subr.bf16.mxu0 %v2023_v0 }
  0x3a   :  { %880 = vmatmul.mubr.f32.gmra.mrb[8].mxu1 %v118_v25  ;;  %v182_v25 = vld [vmem:[%s3560_s0 + $0x510] sm:$0xff] }
  0x3b   :  { %1745 = vmatprep.mubr.msk.f32.mxu1 %vm261_vm0, %v123_v27  ;;  %v187_v27 = vld [vmem:[%s3560_s0 + $0x538] sm:$0xff] }
  0x3c   :  { %1856 = vmatpush1.bf16.msra.mxu0 %v1855_v16  ;;  %v76_v16 = vld [vmem:[%s3560_s0 + $0x1c0] sm:$0xff] }
  0x3d   :  { %1857 = vmatprep.subr.bf16.mxu0 %v2023_v0 }
  0x3e   :  { %885 = vmatmul.mubr.f32.gmra.mrb[10].mxu1 %v122_v29  ;;  %v186_v29 = vld [vmem:[%s3560_s0 + $0x530] sm:$0xff] }
  0x3f   :  { %1746 = vmatprep.mubr.msk.f32.mxu1 %vm261_vm0, %v127_v32  ;;  %v191_v32 = vld [vmem:[%s3560_s0 + $0x558] sm:$0xff] }
  0x40   :  { %1859 = vmatpush1.bf16.msra.mxu0 %v1858_v22  ;;  %v183_v22 = vld [vmem:[%s3560_s0 + $0x518] sm:$0xff] }
  0x41   :  { %1860 = vmatprep.subr.bf16.mxu0 %v2023_v0 }
  0x43   :  { %465 = vmatmul.mubr.f32.vlgmr.msra.gmra.mrb[0].mxu0 %v20_v26  ;;  %v84_v26 = vld [vmem:[%s3560_s0 + $0x200] sm:$0xff] }
  0x44   :  { %1862 = vmatpush1.bf16.msra.mxu0 %v2099_v18  ;;  %469 = vmatprep.mubr.f32.mxu0 %v25_v28  ;;  %v126_v18 = vld [vmem:[%s3560_s0 + $0x350] sm:$0xff]  ;;  %v89_v28 = vld [vmem:[%s3560_s0 + $0x228] sm:$0xff] }
  0x45   :  { %1863 = vmatprep.subr.bf16.mxu0 %v2023_v0  ;;  %890 = vmatmul.mubr.f32.gmra.mrb[12].mxu1 %v126_v18  ;;  %v190_v18 = vld [vmem:[%s3560_s0 + $0x550] sm:$0xff] }
  0x46   :  { %1747 = vmatprep.mubr.msk.f32.mxu1 %vm261_vm0, %v131_v35  ;;  %v195_v35 = vld [vmem:[%s3560_s0 + $0x578] sm:$0xff] }
  0x47   :  { %470 = vmatmul.mubr.f32.gmra.mrb[2].mxu0 %v24_v31  ;;  %v88_v31 = vld [vmem:[%s3560_s0 + $0x220] sm:$0xff] }
  0x48   :  { %474 = vmatprep.mubr.f32.mxu0 %v29_v33  ;;  %1865 = vmatpush1.bf16.msra.mxu0 %v2116_v24  ;;  %v32_v24 = vld [vmem:[%s3560_s0 + $0x60] sm:$0xff]  ;;  %v93_v33 = vld [vmem:[%s3560_s0 + $0x248] sm:$0xff] }
  0x49   :  { %1866 = vmatprep.subr.bf16.mxu0 %v2023_v0  ;;  %895 = vmatmul.mubr.f32.gmra.mrb[14].mxu1 %v130_v38  ;;  %v194_v38 = vld [vmem:[%s3560_s0 + $0x570] sm:$0xff] }
  0x4a   :  { %1748 = vmatprep.mubr.msk.f32.mxu1 %vm261_vm0, %v135_v40  ;;  %v199_v40 = vld [vmem:[%s3560_s0 + $0x598] sm:$0xff] }
  0x4b   :  { %475 = vmatmul.mubr.f32.gmra.mrb[4].mxu0 %v28_v34  ;;  %v92_v34 = vld [vmem:[%s3560_s0 + $0x240] sm:$0xff] }
  0x4c   :  { %479 = vmatprep.mubr.f32.mxu0 %v33_v37  ;;  %1868 = vmatpush1.bf16.msra.mxu0 %v2133_v30  ;;  %v36_v30 = vld [vmem:[%s3560_s0 + $0x80] sm:$0xff]  ;;  %v97_v37 = vld [vmem:[%s3560_s0 + $0x268] sm:$0xff] }
  0x4d   :  { %1869 = vmatprep.subr.bf16.mxu0 %v2023_v0  ;;  %900 = vmatmul.mubr.f32.gmra.mrb[16].mxu1 %v134_v42  ;;  %v198_v42 = vld [vmem:[%s3560_s0 + $0x590] sm:$0xff] }
  0x4e   :  { %1749 = vmatprep.mubr.msk.f32.mxu1 %vm261_vm0, %v139_v43  ;;  %v203_v43 = vld [vmem:[%s3560_s0 + $0x5b8] sm:$0x1] }
  0x4f   :  { %480 = vmatmul.mubr.f32.gmra.mrb[6].mxu0 %v32_v24  ;;  %v96_v24 = vld [vmem:[%s3560_s0 + $0x260] sm:$0xff] }
  0x50   :  { %484 = vmatprep.mubr.f32.mxu0 %v37_v41  ;;  %1871 = vmatpush1.bf16.msra.mxu0 %v2150_v36  ;;  %v40_v36 = vld [vmem:[%s3560_s0 + $0xa0] sm:$0xff]  ;;  %v101_v41 = vld [vmem:[%s3560_s0 + $0x288] sm:$0xff] }
  0x51   :  { %1872 = vmatprep.subr.bf16.mxu0 %v2023_v0  ;;  %905 = vmatmul.mubr.f32.gmra.mrb[18].mxu1 %v138_v46  ;;  %v202_v46 = vld [vmem:[%s3560_s0 + $0x5b0] sm:$0x1] }
  0x52   :  { %1750 = vmatprep.mubr.msk.f32.mxu1 %vm261_vm0, %v143_v47  ;;  %v109_v47 = vld [vmem:[%s3560_s0 + $0x2c8] sm:$0xff] }
  0x53   :  { %485 = vmatmul.mubr.f32.gmra.mrb[8].mxu0 %v36_v30  ;;  %v100_v30 = vld [vmem:[%s3560_s0 + $0x280] sm:$0xff] }
  0x54   :  { %489 = vmatprep.mubr.f32.mxu0 %v41_v44  ;;  %1874 = vmatpush1.bf16.msra.mxu0 %v2159_v39  ;;  %v44_v39 = vld [vmem:[%s3560_s0 + $0xc0] sm:$0xff]  ;;  %v105_v44 = vld [vmem:[%s3560_s0 + $0x2a8] sm:$0xff] }
  0x55   :  { %1875 = vmatprep.subr.bf16.mxu0 %v2023_v0  ;;  %910 = vmatmul.mubr.f32.gmra.mrb[20].mxu1 %v142_v49  ;;  %v113_v49 = vld [vmem:[%s3560_s0 + $0x2e8] sm:$0xff] }
  0x56   :  { %1751 = vmatprep.mubr.msk.f32.mxu1 %vm261_vm0, %v147_v50  ;;  %v117_v50 = vld [vmem:[%s3560_s0 + $0x308] sm:$0xff] }
  0x57   :  { %490 = vmatmul.mubr.f32.gmra.mrb[10].mxu0 %v40_v36  ;;  %v104_v36 = vld [vmem:[%s3560_s0 + $0x2a0] sm:$0xff] }
  0x58   :  { %494 = vmatprep.mubr.f32.mxu0 %v45_v48  ;;  %1877 = vmatpush1.bf16.msra.mxu0 %v2176_v45  ;;  %v48_v45 = vld [vmem:[%s3560_s0 + $0xe0] sm:$0xff] }
  0x59   :  { %1878 = vmatprep.subr.bf16.mxu0 %v2023_v0  ;;  %915 = vmatmul.mubr.f32.gmra.mrb[22].mxu1 %v146_v53  ;;  %v108_v48 = vld [vmem:[%s3560_s0 + $0x2c0] sm:$0xff]  ;;  %v121_v53 = vld [vmem:[%s3560_s0 + $0x328] sm:$0xff] }
  0x5a   :  { %1752 = vmatprep.mubr.msk.f32.mxu1 %vm261_vm0, %v151_v54  ;;  %v125_v54 = vld [vmem:[%s3560_s0 + $0x348] sm:$0xff] }
  0x5b   :  { %495 = vmatmul.mubr.f32.gmra.mrb[12].mxu0 %v44_v39  ;;  %v112_v39 = vld [vmem:[%s3560_s0 + $0x2e0] sm:$0xff] }
  0x5c   :  { %499 = vmatprep.mubr.f32.mxu0 %v49_v51  ;;  %1880 = vmatpush1.bf16.msra.mxu0 %v2197_v52  ;;  %v52_v52 = vld [vmem:[%s3560_s0 + $0x100] sm:$0xff] }
  0x5d   :  { %1881 = vmatprep.subr.bf16.mxu0 %v2023_v0  ;;  %920 = vmatmul.mubr.f32.gmra.mrb[24].mxu1 %v150_v56  ;;  %v116_v51 = vld [vmem:[%s3560_s0 + $0x300] sm:$0xff]  ;;  %v129_v56 = vld [vmem:[%s3560_s0 + $0x368] sm:$0xff] }
  0x5e   :  { %1753 = vmatprep.mubr.msk.f32.mxu1 %vm261_vm0, %v155_v57  ;;  %v133_v57 = vld [vmem:[%s3560_s0 + $0x388] sm:$0xff] }
  0x5f   :  { %500 = vmatmul.mubr.f32.gmra.mrb[14].mxu0 %v48_v45  ;;  %v120_v45 = vld [vmem:[%s3560_s0 + $0x320] sm:$0xff] }
  0x60   :  { %504 = vmatprep.mubr.f32.mxu0 %v53_v55  ;;  %1883 = vmatpush1.bf16.msra.mxu0 %v2214_v58  ;;  %v159_v58 = vld [vmem:[%s3560_s0 + $0x458] sm:$0xff]  ;;  %v124_v55 = vld [vmem:[%s3560_s0 + $0x340] sm:$0xff] }
  0x61   :  { %1884 = vmatprep.subr.bf16.mxu0 %v2023_v0  ;;  %v61_v0 = vld [vmem:[%s3560_s0 + $0x148] sm:$0xff]  ;;  %925 = vmatmul.mubr.f32.gmra.mrb[26].mxu1 %v154_v60 }
  0x62   :  { %1754 = vmatprep.mubr.msk.f32.mxu1 %vm261_vm0, %v159_v58  ;;  %v137_v60 = vld [vmem:[%s3560_s0 + $0x3a8] sm:$0xff] }
  0x63   :  { %505 = vmatmul.mubr.f32.gmra.mrb[16].mxu0 %v52_v52  ;;  %v128_v52 = vld [vmem:[%s3560_s0 + $0x360] sm:$0xff]  ;;  %v141_v58 = vld [vmem:[%s3560_s0 + $0x3c8] sm:$0xff] }
  0x64   :  { %509 = vmatprep.mubr.f32.mxu0 %v57_v59  ;;  %1886 = vmatpush1.bf16.msra.mxu0 %v2231_v1  ;;  %v163_v1 = vld [vmem:[%s3560_s0 + $0x478] sm:$0xff]  ;;  %v132_v59 = vld [vmem:[%s3560_s0 + $0x380] sm:$0xff] }
  0x65   :  { %930 = vmatmul.mubr.f32.gmra.mrb[28].mxu1 %v158_v62  ;;  %v145_v62 = vld [vmem:[%s3560_s0 + $0x3e8] sm:$0xff] }
  0x66   :  { %1755 = vmatprep.mubr.msk.f32.mxu1 %vm261_vm0, %v163_v1  ;;  %v149_v1 = vld [vmem:[%s3560_s0 + $0x408] sm:$0xff] }
  0x67   :  { %510 = vmatmul.mubr.f32.gmra.mrb[18].mxu0 %v56_v61  ;;  %v136_v61 = vld [vmem:[%s3560_s0 + $0x3a0] sm:$0xff] }
  0x68   :  { %514 = vmatprep.mubr.f32.mxu0 %v61_v0  ;;  %v140_v0 = vld [vmem:[%s3560_s0 + $0x3c0] sm:$0xff] }
  0x69   :  { %935 = vmatmul.mubr.f32.gmra.mrb[30].mxu1 %v162_v3  ;;  %v153_v3 = vld [vmem:[%s3560_s0 + $0x428] sm:$0xff] }
  0x6a   :  { %1756 = vmatprep.mubr.msk.f32.mxu1 %vm261_vm0, %v167_v5  ;;  %v157_v5 = vld [vmem:[%s3560_s0 + $0x448] sm:$0xff] }
  0x6b   :  { %515 = vmatmul.mubr.f32.gmra.mrb[20].mxu0 %v60_v63  ;;  %v144_v63 = vld [vmem:[%s3560_s0 + $0x3e0] sm:$0xff] }
  0x6c   :  { %519 = vmatprep.mubr.f32.mxu0 %v65_v2  ;;  %v148_v2 = vld [vmem:[%s3560_s0 + $0x400] sm:$0xff] }
  0x6d   :  { %940 = vmatmul.mubr.f32.gmra.mrb[32].mxu1 %v166_v7  ;;  %v161_v7 = vld [vmem:[%s3560_s0 + $0x468] sm:$0xff] }
  0x6e   :  { %1757 = vmatprep.mubr.msk.f32.mxu1 %vm261_vm0, %v171_v9  ;;  %v165_v9 = vld [vmem:[%s3560_s0 + $0x488] sm:$0xff] }
  0x6f   :  { %520 = vmatmul.mubr.f32.gmra.mrb[22].mxu0 %v64_v4  ;;  %v152_v4 = vld [vmem:[%s3560_s0 + $0x420] sm:$0xff] }
  0x70   :  { %524 = vmatprep.mubr.f32.mxu0 %v69_v6  ;;  %v156_v6 = vld [vmem:[%s3560_s0 + $0x440] sm:$0xff] }
  0x71   :  { %945 = vmatmul.mubr.f32.gmra.mrb[34].mxu1 %v170_v11  ;;  %v169_v11 = vld [vmem:[%s3560_s0 + $0x4a8] sm:$0xff] }
  0x72   :  { %1758 = vmatprep.mubr.msk.f32.mxu1 %vm261_vm0, %v175_v13  ;;  %v173_v13 = vld [vmem:[%s3560_s0 + $0x4c8] sm:$0xff] }
  0x73   :  { %525 = vmatmul.mubr.f32.gmra.mrb[24].mxu0 %v68_v8  ;;  %v160_v8 = vld [vmem:[%s3560_s0 + $0x460] sm:$0xff] }
  0x74   :  { %529 = vmatprep.mubr.f32.mxu0 %v73_v10  ;;  %v164_v10 = vld [vmem:[%s3560_s0 + $0x480] sm:$0xff] }
  0x75   :  { %950 = vmatmul.mubr.f32.gmra.mrb[36].mxu1 %v174_v15  ;;  %v177_v15 = vld [vmem:[%s3560_s0 + $0x4e8] sm:$0xff] }
  0x76   :  { %1759 = vmatprep.mubr.msk.f32.mxu1 %vm261_vm0, %v179_v17  ;;  %v181_v17 = vld [vmem:[%s3560_s0 + $0x508] sm:$0xff] }
  0x77   :  { %530 = vmatmul.mubr.f32.gmra.mrb[26].mxu0 %v72_v12  ;;  %v168_v12 = vld [vmem:[%s3560_s0 + $0x4a0] sm:$0xff] }
  0x78   :  { %534 = vmatprep.mubr.f32.mxu0 %v77_v14  ;;  %v172_v14 = vld [vmem:[%s3560_s0 + $0x4c0] sm:$0xff] }
  0x79   :  { %955 = vmatmul.mubr.f32.gmra.mrb[38].mxu1 %v178_v20  ;;  %v185_v20 = vld [vmem:[%s3560_s0 + $0x528] sm:$0xff] }
  0x7a   :  { %1760 = vmatprep.mubr.msk.f32.mxu1 %vm261_vm0, %v183_v22  ;;  %v189_v22 = vld [vmem:[%s3560_s0 + $0x548] sm:$0xff] }
  0x7b   :  { %535 = vmatmul.mubr.f32.gmra.mrb[28].mxu0 %v76_v16  ;;  %v176_v16 = vld [vmem:[%s3560_s0 + $0x4e0] sm:$0xff] }
  0x7c   :  { %539 = vmatprep.mubr.f32.mxu0 %v81_v19  ;;  %v180_v19 = vld [vmem:[%s3560_s0 + $0x500] sm:$0xff] }
  0x7d   :  { %960 = vmatmul.mubr.f32.gmra.mrb[40].mxu1 %v182_v25  ;;  %v193_v25 = vld [vmem:[%s3560_s0 + $0x568] sm:$0xff] }
  0x7e   :  { %1761 = vmatprep.mubr.msk.f32.mxu1 %vm261_vm0, %v187_v27  ;;  %v1037_v27 = vld [vmem:[%s3561_s3 + $0x8] sm:$0xff] }
  0x7f   :  { %540 = vmatmul.mubr.f32.gmra.mrb[30].mxu0 %v80_v21  ;;  %v184_v21 = vld [vmem:[%s3560_s0 + $0x520] sm:$0xff] }
  0x80   :  { %544 = vmatprep.mubr.f32.mxu0 %v85_v23  ;;  %v188_v23 = vld [vmem:[%s3560_s0 + $0x540] sm:$0xff] }
  0x81   :  { %965 = vmatmul.mubr.f32.gmra.mrb[42].mxu1 %v186_v29  ;;  %v1036_v29 = vld [vmem:[%s3561_s3] sm:$0xff] }
  0x82   :  { %1762 = vmatprep.mubr.msk.f32.mxu1 %vm261_vm0, %v191_v32 }
  0x83   :  { %545 = vmatmul.mubr.f32.gmra.mrb[32].mxu0 %v84_v26  ;;  %v192_v26 = vld [vmem:[%s3560_s0 + $0x560] sm:$0xff] }
  0x84   :  { %549 = vmatprep.mubr.f32.mxu0 %v89_v28  ;;  %v1039_v28 = vld [vmem:[%s3561_s3 + $0x18] sm:$0xff] }
  0x85   :  { %970 = vmatmul.mubr.f32.gmra.mrb[44].mxu1 %v190_v18  ;;  %v1887_v32 = vpack.c.bf16 %v1039_v28, %v1037_v27  ;;  %v82_v28 = vld [vmem:[%s3560_s0 + $0x1f0] sm:$0xff] }
  0x86   :  { %1763 = vmatprep.mubr.msk.f32.mxu1 %vm261_vm0, %v195_v35  ;;  %v201_v35 = vld [vmem:[%s3560_s0 + $0x5a8] sm:$0x1] }
  0x87   :  { %550 = vmatmul.mubr.f32.gmra.mrb[34].mxu0 %v88_v31  ;;  %v197_v31 = vld [vmem:[%s3560_s0 + $0x588] sm:$0xff]  ;;  %1888 = vmatprep.subr.bf16.mxu1 %v1887_v32 }
  0x88   :  { %554 = vmatprep.mubr.f32.mxu0 %v93_v33  ;;  %v1038_v33 = vld [vmem:[%s3561_s3 + $0x10] sm:$0xff] }
  0x89   :  { %975 = vmatmul.mubr.f32.gmra.mrb[46].mxu1 %v194_v38  ;;  %v1889_v18 = vpack.c.bf16 %v1038_v33, %v1036_v29  ;;  %v23_v38 = vld [vmem:[%s3560_s0 + $0x18] sm:$0xff]  ;;  %v86_v33 = vld [vmem:[%s3560_s0 + $0x210] sm:$0xff] }
  0x8a   :  { %1764 = vmatprep.mubr.msk.f32.mxu1 %vm261_vm0, %v199_v40  ;;  %v27_v40 = vld [vmem:[%s3560_s0 + $0x38] sm:$0xff] }
  0x8b   :  { %555 = vmatmul.mubr.f32.gmra.mrb[36].mxu0 %v92_v34  ;;  %v196_v34 = vld [vmem:[%s3560_s0 + $0x580] sm:$0xff]  ;;  %1890 = vmatpush1.bf16.msra.mxu1 %v1889_v18  ;;  %v87_v29 = vld [vmem:[%s3560_s0 + $0x218] sm:$0xff] }
  0x8c   :  { %559 = vmatprep.mubr.f32.mxu0 %v97_v37  ;;  %v200_v37 = vld [vmem:[%s3560_s0 + $0x5a0] sm:$0x1]  ;;  %v91_v18 = vld [vmem:[%s3560_s0 + $0x238] sm:$0xff] }
  0x8d   :  { %980 = vmatmul.mubr.f32.gmra.mrb[48].mxu1 %v198_v42  ;;  %v31_v42 = vld [vmem:[%s3560_s0 + $0x58] sm:$0xff] }
  0x8e   :  { %1765 = vmatprep.mubr.msk.f32.mxu1 %vm261_vm0, %v203_v43  ;;  %v35_v43 = vld [vmem:[%s3560_s0 + $0x78] sm:$0xff] }
  0x8f   :  { %560 = vmatmul.mubr.f32.gmra.mrb[38].mxu0 %v96_v24  ;;  %v22_v24 = vld [vmem:[%s3560_s0 + $0x10] sm:$0xff] }
  0x90   :  { %564 = vmatprep.mubr.f32.mxu0 %v101_v41  ;;  %v26_v41 = vld [vmem:[%s3560_s0 + $0x30] sm:$0xff] }
  0x91   :  { %985 = vmatmul.mubr.f32.gmra.mrb[50].mxu1 %v202_v46  ;;  %v39_v46 = vld [vmem:[%s3560_s0 + $0x98] sm:$0xff] }
  0x93   :  { %565 = vmatmul.mubr.f32.gmra.mrb[40].mxu0 %v100_v30  ;;  %v30_v30 = vld [vmem:[%s3560_s0 + $0x50] sm:$0xff] }
  0x94   :  { %569 = vmatprep.mubr.f32.mxu0 %v105_v44  ;;  %v34_v44 = vld [vmem:[%s3560_s0 + $0x70] sm:$0xff] }
  0x97   :  { %570 = vmatmul.mubr.f32.gmra.mrb[42].mxu0 %v104_v36 }
  0x98   :  { %574 = vmatprep.mubr.f32.mxu0 %v109_v47 }
  0x9b   :  { %575 = vmatmul.mubr.f32.gmra.mrb[44].mxu0 %v108_v48  ;;  %v38_v48 = vld [vmem:[%s3560_s0 + $0x90] sm:$0xff] }
  0x9c   :  { %579 = vmatprep.mubr.f32.mxu0 %v113_v49  ;;  %v43_v49 = vld [vmem:[%s3560_s0 + $0xb8] sm:$0xff] }
  0x9f   :  { %580 = vmatmul.mubr.f32.gmra.mrb[46].mxu0 %v112_v39 }
  0xa0   :  { %584 = vmatprep.mubr.f32.mxu0 %v117_v50 }
  0xa3   :  { %585 = vmatmul.mubr.f32.gmra.mrb[48].mxu0 %v116_v51  ;;  %v42_v51 = vld [vmem:[%s3560_s0 + $0xb0] sm:$0xff] }
  0xa4   :  { %589 = vmatprep.mubr.f32.mxu0 %v121_v53  ;;  %v47_v53 = vld [vmem:[%s3560_s0 + $0xd8] sm:$0xff] }
  0xa7   :  { %590 = vmatmul.mubr.f32.gmra.mrb[50].mxu0 %v120_v45 }
  0xa8   :  { %594 = vmatprep.mubr.f32.mxu0 %v125_v54 }
  0xab   :  { %595 = vmatmul.mubr.f32.gmra.mrb[52].mxu0 %v124_v55  ;;  %v46_v55 = vld [vmem:[%s3560_s0 + $0xd0] sm:$0xff] }
  0xac   :  { %599 = vmatprep.mubr.f32.mxu0 %v129_v56  ;;  %v51_v56 = vld [vmem:[%s3560_s0 + $0xf8] sm:$0xff] }
  0xaf   :  { %600 = vmatmul.mubr.f32.gmra.mrb[54].mxu0 %v128_v52 }
  0xb0   :  { %604 = vmatprep.mubr.f32.mxu0 %v133_v57 }
  0xb3   :  { %605 = vmatmul.mubr.f32.gmra.mrb[56].mxu0 %v132_v59  ;;  %v50_v59 = vld [vmem:[%s3560_s0 + $0xf0] sm:$0xff] }
  0xb4   :  { %609 = vmatprep.mubr.f32.mxu0 %v137_v60  ;;  %v55_v60 = vld [vmem:[%s3560_s0 + $0x118] sm:$0xff] }
  0xb7   :  { %610 = vmatmul.mubr.f32.gmra.mrb[58].mxu0 %v136_v61 }
  0xb8   :  { %614 = vmatprep.mubr.f32.mxu0 %v141_v58 }
  0xbb   :  { %615 = vmatmul.mubr.f32.gmra.mrb[60].mxu0 %v140_v0  ;;  %v54_v0 = vld [vmem:[%s3560_s0 + $0x110] sm:$0xff] }
  0xbc   :  { %619 = vmatprep.mubr.f32.mxu0 %v145_v62  ;;  %v59_v62 = vld [vmem:[%s3560_s0 + $0x138] sm:$0xff] }
  0xbf   :  { %620 = vmatmul.mubr.f32.gmra.mrb[62].mxu0 %v144_v63 }
  0xc0   :  { %624 = vmatprep.mubr.f32.mxu0 %v149_v1 }
  0xc3   :  { %625 = vmatmul.mubr.f32.gmra.mrb[64].mxu0 %v148_v2  ;;  %v58_v2 = vld [vmem:[%s3560_s0 + $0x130] sm:$0xff] }
  0xc4   :  { %629 = vmatprep.mubr.f32.mxu0 %v153_v3  ;;  %v63_v3 = vld [vmem:[%s3560_s0 + $0x158] sm:$0xff] }
  0xc7   :  { %630 = vmatmul.mubr.f32.gmra.mrb[66].mxu0 %v152_v4 }
  0xc8   :  { %634 = vmatprep.mubr.f32.mxu0 %v157_v5 }
  0xcb   :  { %635 = vmatmul.mubr.f32.gmra.mrb[68].mxu0 %v156_v6  ;;  %v62_v6 = vld [vmem:[%s3560_s0 + $0x150] sm:$0xff] }
  0xcc   :  { %639 = vmatprep.mubr.f32.mxu0 %v161_v7  ;;  %v67_v7 = vld [vmem:[%s3560_s0 + $0x178] sm:$0xff] }
  0xcf   :  { %640 = vmatmul.mubr.f32.gmra.mrb[70].mxu0 %v160_v8 }
  0xd0   :  { %644 = vmatprep.mubr.f32.mxu0 %v165_v9 }
  0xd3   :  { %645 = vmatmul.mubr.f32.gmra.mrb[72].mxu0 %v164_v10  ;;  %v66_v10 = vld [vmem:[%s3560_s0 + $0x170] sm:$0xff] }
  0xd4   :  { %649 = vmatprep.mubr.f32.mxu0 %v169_v11  ;;  %v71_v11 = vld [vmem:[%s3560_s0 + $0x198] sm:$0xff] }
  0xd7   :  { %650 = vmatmul.mubr.f32.gmra.mrb[74].mxu0 %v168_v12 }
  0xd8   :  { %654 = vmatprep.mubr.f32.mxu0 %v173_v13 }
  0xdb   :  { %655 = vmatmul.mubr.f32.gmra.mrb[76].mxu0 %v172_v14  ;;  %v70_v14 = vld [vmem:[%s3560_s0 + $0x190] sm:$0xff] }
  0xdc   :  { %659 = vmatprep.mubr.f32.mxu0 %v177_v15  ;;  %v75_v15 = vld [vmem:[%s3560_s0 + $0x1b8] sm:$0xff] }
  0xdf   :  { %660 = vmatmul.mubr.f32.gmra.mrb[78].mxu0 %v176_v16 }
  0xe0   :  { %664 = vmatprep.mubr.f32.mxu0 %v181_v17 }
  0xe3   :  { %665 = vmatmul.mubr.f32.gmra.mrb[80].mxu0 %v180_v19  ;;  %v74_v19 = vld [vmem:[%s3560_s0 + $0x1b0] sm:$0xff] }
  0xe4   :  { %669 = vmatprep.mubr.f32.mxu0 %v185_v20  ;;  %v79_v20 = vld [vmem:[%s3560_s0 + $0x1d8] sm:$0xff] }
  0xe7   :  { %670 = vmatmul.mubr.f32.gmra.mrb[82].mxu0 %v184_v21 }
  0xe8   :  { %674 = vmatprep.mubr.f32.mxu0 %v189_v22 }
  0xeb   :  { %675 = vmatmul.mubr.f32.gmra.mrb[84].mxu0 %v188_v23  ;;  %v78_v23 = vld [vmem:[%s3560_s0 + $0x1d0] sm:$0xff] }
  0xec   :  { %679 = vmatprep.mubr.f32.mxu0 %v193_v25  ;;  %v83_v25 = vld [vmem:[%s3560_s0 + $0x1f8] sm:$0xff] }
  0xef   :  { %680 = vmatmul.mubr.f32.gmra.mrb[86].mxu0 %v192_v26 }
  0xf0   :  { %684 = vmatprep.mubr.f32.mxu0 %v197_v31 }
  0xf3   :  { %685 = vmatmul.mubr.f32.gmra.mrb[88].mxu0 %v196_v34 }
  0xf4   :  { %689 = vmatprep.mubr.f32.mxu0 %v201_v35 }
  0xf7   :  { %690 = vmatmul.mubr.f32.gmra.mrb[90].mxu0 %v200_v37  ;;  %v90_v37 = vld [vmem:[%s3560_s0 + $0x230] sm:$0xff] }
  0xf8   :  { %1720 = vmatprep.mubr.msk.f32.mxu0 %vm261_vm0, %v23_v38  ;;  %v95_v38 = vld [vmem:[%s3560_s0 + $0x258] sm:$0xff] }
  0xfb   :  { %760 = vmatmul.mubr.f32.vlgmr.msra.gmra.mrb[0].mxu0 %v22_v24 }
  0xfc   :  { %1721 = vmatprep.mubr.msk.f32.mxu0 %vm261_vm0, %v27_v40 }
  0xfd   :  { %v2776_v36 = vpop.f32.mrb[0].mxu1 }
  0xfe   :  { %v863_v47 = vpop.f32.mrb[1].mxu1 }
  0xff   :  { %765 = vmatmul.mubr.f32.gmra.mrb[2].mxu0 %v26_v41  ;;  %v94_v41 = vld [vmem:[%s3560_s0 + $0x250] sm:$0xff] }
 0x100   :  { %1722 = vmatprep.mubr.msk.f32.mxu0 %vm261_vm0, %v31_v42  ;;  %v99_v42 = vld [vmem:[%s3560_s0 + $0x278] sm:$0xff] }
 0x101   :  { %v2785_v39 = vpop.f32.mrb[2].mxu1 }
 0x102   :  { %v868_v50 = vpop.f32.mrb[3].mxu1 }
 0x103   :  { %770 = vmatmul.mubr.f32.gmra.mrb[4].mxu0 %v30_v30 }
 0x104   :  { %1723 = vmatprep.mubr.msk.f32.mxu0 %vm261_vm0, %v35_v43 }
 0x105   :  { %v2794_v45 = vpop.f32.mrb[4].mxu1 }
 0x106   :  { %v873_v54 = vpop.f32.mrb[5].mxu1 }
 0x107   :  { %775 = vmatmul.mubr.f32.gmra.mrb[6].mxu0 %v34_v44  ;;  %v98_v44 = vld [vmem:[%s3560_s0 + $0x270] sm:$0xff] }
 0x108   :  { %1724 = vmatprep.mubr.msk.f32.mxu0 %vm261_vm0, %v39_v46 }
 0x109   :  { %v2803_v52 = vpop.f32.mrb[6].mxu1 }
 0x10a   :  { %v878_v57 = vpop.f32.mrb[7].mxu1 }
 0x10b   :  { %780 = vmatmul.mubr.f32.gmra.mrb[8].mxu0 %v38_v48 }
 0x10c   :  { %1725 = vmatprep.mubr.msk.f32.mxu0 %vm261_vm0, %v43_v49 }
 0x10d   :  { %v2812_v61 = vpop.f32.mrb[8].mxu1 }
 0x10e   :  { %v883_v58 = vpop.f32.mrb[9].mxu1 }
 0x10f   :  { %785 = vmatmul.mubr.f32.gmra.mrb[10].mxu0 %v42_v51 }
 0x110   :  { %1726 = vmatprep.mubr.msk.f32.mxu0 %vm261_vm0, %v47_v53 }
 0x111   :  { %v2821_v63 = vpop.f32.mrb[10].mxu1 }
 0x112   :  { %v888_v1 = vpop.f32.mrb[11].mxu1 }
 0x113   :  { %790 = vmatmul.mubr.f32.gmra.mrb[12].mxu0 %v46_v55  ;;  %v2024_v55 = vmov 0.0  }
 0x114   :  { %1727 = vmatprep.mubr.msk.f32.mxu0 %vm261_vm0, %v51_v56  ;;  %1254 = vmatprep.mubr.f32.mxu1 %v2024_v55 }
 0x117   :  { %795 = vmatmul.mubr.f32.gmra.mrb[14].mxu0 %v50_v59 }
 0x118   :  { %1728 = vmatprep.mubr.msk.f32.mxu0 %vm261_vm0, %v55_v60  ;;  %v2830_v4 = vpop.f32.mrb[12].mxu1 }
 0x119   :  { %v893_v5 = vpop.f32.mrb[13].mxu1 }
 0x11b   :  { %800 = vmatmul.mubr.f32.gmra.mrb[16].mxu0 %v54_v0 }
 0x11c   :  { %1729 = vmatprep.mubr.msk.f32.mxu0 %vm261_vm0, %v59_v62  ;;  %v2839_v8 = vpop.f32.mrb[14].mxu1 }
 0x11d   :  { %v898_v9 = vpop.f32.mrb[15].mxu1 }
 0x11f   :  { %805 = vmatmul.mubr.f32.gmra.mrb[18].mxu0 %v58_v2  ;;  %v2937_v2 = vld [vmem:[%s3562_s2] ss:$0 sm:$0xff] }
 0x120   :  { %1730 = vmatprep.mubr.msk.f32.mxu0 %vm261_vm0, %v63_v3  ;;  %v2848_v12 = vpop.f32.mrb[16].mxu1 }
 0x121   :  { %v903_v13 = vpop.f32.mrb[17].mxu1 }
 0x123   :  { %810 = vmatmul.mubr.f32.gmra.mrb[20].mxu0 %v62_v6 }
 0x124   :  { %1731 = vmatprep.mubr.msk.f32.mxu0 %vm261_vm0, %v67_v7  ;;  %v2857_v16 = vpop.f32.mrb[18].mxu1 }
 0x125   :  { %v908_v17 = vpop.f32.mrb[19].mxu1 }
 0x127   :  { %815 = vmatmul.mubr.f32.gmra.mrb[22].mxu0 %v66_v10 }
 0x128   :  { %1732 = vmatprep.mubr.msk.f32.mxu0 %vm261_vm0, %v71_v11  ;;  %v2866_v21 = vpop.f32.mrb[20].mxu1 }
 0x129   :  { %v913_v22 = vpop.f32.mrb[21].mxu1 }
 0x12b   :  { %820 = vmatmul.mubr.f32.gmra.mrb[24].mxu0 %v70_v14 }
 0x12c   :  { %1733 = vmatprep.mubr.msk.f32.mxu0 %vm261_vm0, %v75_v15  ;;  %v2875_v26 = vpop.f32.mrb[22].mxu1 }
 0x12d   :  { %v918_v27 = vpop.f32.mrb[23].mxu1 }
 0x12f   :  { %825 = vmatmul.mubr.f32.gmra.mrb[26].mxu0 %v74_v19 }
 0x130   :  { %1734 = vmatprep.mubr.msk.f32.mxu0 %vm261_vm0, %v79_v20  ;;  %v2884_v31 = vpop.f32.mrb[24].mxu1 }
 0x131   :  { %v923_v32 = vpop.f32.mrb[25].mxu1 }
 0x133   :  { %830 = vmatmul.mubr.f32.gmra.mrb[28].mxu0 %v78_v23 }
 0x134   :  { %1735 = vmatprep.mubr.msk.f32.mxu0 %vm261_vm0, %v83_v25  ;;  %v2893_v34 = vpop.f32.mrb[26].mxu1 }
 0x135   :  { %v928_v35 = vpop.f32.mrb[27].mxu1 }
 0x137   :  { %835 = vmatmul.mubr.f32.gmra.mrb[30].mxu0 %v82_v28 }
 0x138   :  { %1736 = vmatprep.mubr.msk.f32.mxu0 %vm261_vm0, %v87_v29  ;;  %v2902_v24 = vpop.f32.mrb[28].mxu1 }
 0x139   :  { %v933_v40 = vpop.f32.mrb[29].mxu1 }
 0x13b   :  { %840 = vmatmul.mubr.f32.gmra.mrb[32].mxu0 %v86_v33 }
 0x13c   :  { %1737 = vmatprep.mubr.msk.f32.mxu0 %vm261_vm0, %v91_v18  ;;  %v2911_v30 = vpop.f32.mrb[30].mxu1 }
 0x13d   :  { %v938_v43 = vpop.f32.mrb[31].mxu1 }
 0x13f   :  { %845 = vmatmul.mubr.f32.gmra.mrb[34].mxu0 %v90_v37 }
 0x140   :  { %1738 = vmatprep.mubr.msk.f32.mxu0 %vm261_vm0, %v95_v38  ;;  %v2917_v46 = vpop.f32.mrb[32].mxu1 }
 0x141   :  { %v943_v47 = vpop.f32.mrb[33].mxu1 }
 0x143   :  { %850 = vmatmul.mubr.f32.gmra.mrb[36].mxu0 %v94_v41 }
 0x144   :  { %1739 = vmatprep.mubr.msk.f32.mxu0 %vm261_vm0, %v99_v42  ;;  %v2919_v48 = vpop.f32.mrb[34].mxu1 }
 0x145   :  { %v948_v49 = vpop.f32.mrb[35].mxu1 }
 0x147   :  { %855 = vmatmul.mubr.f32.gmra.mrb[38].mxu0 %v98_v44 }
 0x148   :  { %v2921_v50 = vpop.f32.mrb[36].mxu1 }
 0x149   :  { %v953_v51 = vpop.f32.mrb[37].mxu1 }
 0x14c   :  { %v2923_v53 = vpop.f32.mrb[38].mxu1 }
 0x14d   :  { %v958_v54 = vpop.f32.mrb[39].mxu1 }
 0x150   :  { %v2926_v56 = vpop.f32.mrb[40].mxu1 }
 0x151   :  { %v963_v57 = vpop.f32.mrb[41].mxu1 }
 0x154   :  { %v2928_v59 = vpop.f32.mrb[42].mxu1 }
 0x155   :  { %v968_v60 = vpop.f32.mrb[43].mxu1 }
 0x158   :  { %v2930_v58 = vpop.f32.mrb[44].mxu1 }
 0x159   :  { %v973_v0 = vpop.f32.mrb[45].mxu1 }
 0x15c   :  { %v2932_v62 = vpop.f32.mrb[46].mxu1 }
 0x15d   :  { %v978_v1 = vpop.f32.mrb[47].mxu1 }
 0x160   :  { %v2939_v3 = vpop.f32.mrb[48].mxu1 }
 0x161   :  { %v983_v6 = vpop.f32.mrb[49].mxu1 }
 0x164   :  { %v2945_v11 = vpop.f32.mrb[50].mxu1 }
 0x165   :  { %v988_v14 = vpop.f32.mrb[51].mxu1 }
 0x166   :  { %v566_v5 = vpop.f32.mrb[40].mxu0 }
 0x167   :  { %v567_v7 = vadd.f32 %v2937_v2, %v566_v5  ;;  %v568_v9 = vpop.f32.mrb[41].mxu0 }
 0x169   :  { %v2943_v10 = vadd.f32 %v2776_v36, %v567_v7 }
 0x16a   :  { %v571_v13 = vpop.f32.mrb[42].mxu0 }
 0x16b   :  { %v572_v15 = vadd.f32 %v2937_v2, %v571_v13  ;;  %v573_v17 = vpop.f32.mrb[43].mxu0 }
 0x16d   :  { %v2949_v19 = vadd.f32 %v2785_v39, %v572_v15 }
 0x16e   :  { %v576_v20 = vpop.f32.mrb[44].mxu0 }
 0x16f   :  { %v577_v22 = vadd.f32 %v2937_v2, %v576_v20  ;;  %v578_v23 = vpop.f32.mrb[45].mxu0 }
 0x171   :  { %v2953_v25 = vadd.f32 %v2794_v45, %v577_v22 }
 0x172   :  { %v581_v27 = vpop.f32.mrb[46].mxu0 }
 0x173   :  { %v582_v36 = vadd.f32 %v2937_v2, %v581_v27  ;;  %v583_v28 = vpop.f32.mrb[47].mxu0 }
 0x175   :  { %v2957_v29 = vadd.f32 %v2803_v52, %v582_v36 }
 0x176   :  { %v586_v32 = vpop.f32.mrb[48].mxu0 }
 0x177   :  { %v587_v33 = vadd.f32 %v2937_v2, %v586_v32  ;;  %v588_v18 = vpop.f32.mrb[49].mxu0 }
 0x179   :  { %v2961_v39 = vadd.f32 %v2812_v61, %v587_v33 }
 0x17a   :  { %v591_v35 = vpop.f32.mrb[50].mxu0 }
 0x17b   :  { %v592_v37 = vadd.f32 %v2937_v2, %v591_v35  ;;  %v593_v38 = vpop.f32.mrb[51].mxu0 }
 0x17d   :  { %v2965_v45 = vadd.f32 %v2821_v63, %v592_v37 }
 0x17e   :  { %v596_v40 = vpop.f32.mrb[52].mxu0 }
 0x17f   :  { %v597_v41 = vadd.f32 %v2937_v2, %v596_v40  ;;  %v598_v42 = vpop.f32.mrb[53].mxu0 }
 0x181   :  { %v2969_v52 = vadd.f32 %v2830_v4, %v597_v41 }
 0x182   :  { %v601_v43 = vpop.f32.mrb[54].mxu0 }
 0x183   :  { %v602_v44 = vadd.f32 %v2937_v2, %v601_v43  ;;  %v603_v47 = vpop.f32.mrb[55].mxu0 }
 0x185   :  { %v2973_v61 = vadd.f32 %v2839_v8, %v602_v44 }
 0x186   :  { %v606_v49 = vpop.f32.mrb[56].mxu0 }
 0x187   :  { %v607_v51 = vadd.f32 %v2937_v2, %v606_v49  ;;  %v608_v54 = vpop.f32.mrb[57].mxu0 }
 0x189   :  { %v2977_v63 = vadd.f32 %v2848_v12, %v607_v51 }
 0x18a   :  { %v611_v57 = vpop.f32.mrb[58].mxu0 }
 0x18b   :  { %v612_v60 = vadd.f32 %v2937_v2, %v611_v57  ;;  %v613_v0 = vpop.f32.mrb[59].mxu0 }
 0x18d   :  { %v2981_v4 = vadd.f32 %v2857_v16, %v612_v60 }
 0x18e   :  { %v616_v1 = vpop.f32.mrb[60].mxu0 }
 0x18f   :  { %v617_v5 = vadd.f32 %v2937_v2, %v616_v1  ;;  %v618_v6 = vpop.f32.mrb[61].mxu0 }
 0x191   :  { %v2985_v8 = vadd.f32 %v2866_v21, %v617_v5 }
 0x192   :  { %v621_v7 = vpop.f32.mrb[62].mxu0 }
 0x193   :  { %v622_v9 = vadd.f32 %v2937_v2, %v621_v7  ;;  %v623_v13 = vpop.f32.mrb[63].mxu0 }
 0x195   :  { %v2989_v12 = vadd.f32 %v2875_v26, %v622_v9 }
 0x196   :  { %v626_v14 = vpop.f32.mrb[64].mxu0 }
 0x197   :  { %v627_v15 = vadd.f32 %v2937_v2, %v626_v14  ;;  %v628_v17 = vpop.f32.mrb[65].mxu0 }
 0x199   :  { %v2993_v16 = vadd.f32 %v2884_v31, %v627_v15 }
 0x19a   :  { %v631_v20 = vpop.f32.mrb[66].mxu0 }
 0x19b   :  { %v632_v22 = vadd.f32 %v2937_v2, %v631_v20  ;;  %v633_v23 = vpop.f32.mrb[67].mxu0 }
 0x19d   :  { %v2997_v21 = vadd.f32 %v2893_v34, %v632_v22 }
 0x19e   :  { %v636_v27 = vpop.f32.mrb[68].mxu0 }
 0x19f   :  { %v637_v36 = vadd.f32 %v2937_v2, %v636_v27  ;;  %v638_v28 = vpop.f32.mrb[69].mxu0 }
 0x1a1   :  { %v3001_v26 = vadd.f32 %v2902_v24, %v637_v36 }
 0x1a2   :  { %v641_v32 = vpop.f32.mrb[70].mxu0 }
 0x1a3   :  { %v642_v33 = vadd.f32 %v2937_v2, %v641_v32  ;;  %v643_v18 = vpop.f32.mrb[71].mxu0 }
 0x1a5   :  { %v3005_v31 = vadd.f32 %v2911_v30, %v642_v33 }
 0x1a6   :  { %v646_v35 = vpop.f32.mrb[72].mxu0 }
 0x1a7   :  { %v647_v37 = vadd.f32 %v2937_v2, %v646_v35  ;;  %v648_v38 = vpop.f32.mrb[73].mxu0 }
 0x1a9   :  { %v3009_v34 = vadd.f32 %v2917_v46, %v647_v37 }
 0x1aa   :  { %v651_v40 = vpop.f32.mrb[74].mxu0 }
 0x1ab   :  { %v652_v41 = vadd.f32 %v2937_v2, %v651_v40  ;;  %v653_v42 = vpop.f32.mrb[75].mxu0 }
 0x1ad   :  { %v3013_v24 = vadd.f32 %v2919_v48, %v652_v41 }
 0x1ae   :  { %v656_v43 = vpop.f32.mrb[76].mxu0 }
 0x1af   :  { %v657_v44 = vadd.f32 %v2937_v2, %v656_v43  ;;  %v658_v47 = vpop.f32.mrb[77].mxu0 }
 0x1b1   :  { %v3017_v30 = vadd.f32 %v2921_v50, %v657_v44 }
 0x1b2   :  { %v661_v49 = vpop.f32.mrb[78].mxu0 }
 0x1b3   :  { %v662_v51 = vadd.f32 %v2937_v2, %v661_v49  ;;  %v663_v54 = vpop.f32.mrb[79].mxu0 }
 0x1b5   :  { %v3021_v46 = vadd.f32 %v2923_v53, %v662_v51 }
 0x1b6   :  { %v666_v57 = vpop.f32.mrb[80].mxu0 }
 0x1b7   :  { %v667_v60 = vadd.f32 %v2937_v2, %v666_v57  ;;  %v668_v0 = vpop.f32.mrb[81].mxu0 }
 0x1b9   :  { %v3025_v48 = vadd.f32 %v2926_v56, %v667_v60 }
 0x1ba   :  { %v671_v1 = vpop.f32.mrb[82].mxu0 }
 0x1bb   :  { %v672_v5 = vadd.f32 %v2937_v2, %v671_v1  ;;  %v673_v6 = vpop.f32.mrb[83].mxu0 }
 0x1bd   :  { %v3029_v50 = vadd.f32 %v2928_v59, %v672_v5 }
 0x1be   :  { %v676_v7 = vpop.f32.mrb[84].mxu0 }
 0x1bf   :  { %v677_v9 = vadd.f32 %v2937_v2, %v676_v7  ;;  %v678_v13 = vpop.f32.mrb[85].mxu0 }
 0x1c1   :  { %v3033_v53 = vadd.f32 %v2930_v58, %v677_v9 }
 0x1c2   :  { %v681_v14 = vpop.f32.mrb[86].mxu0 }
 0x1c3   :  { %v682_v15 = vadd.f32 %v2937_v2, %v681_v14  ;;  %v683_v17 = vpop.f32.mrb[87].mxu0 }
 0x1c5   :  { %v3037_v56 = vadd.f32 %v2932_v62, %v682_v15 }
 0x1c6   :  { %v686_v20 = vpop.f32.mrb[88].mxu0 }
 0x1c7   :  { %v687_v22 = vadd.f32 %v2937_v2, %v686_v20  ;;  %v688_v23 = vpop.f32.mrb[89].mxu0 }
 0x1c9   :  { %v3041_v59 = vadd.f32 %v2939_v3, %v687_v22 }
 0x1ca   :  { %v691_v27 = vpop.f32.mrb[90].mxu0 }
 0x1cb   :  { %v692_v36 = vadd.f32 %v2937_v2, %v691_v27  ;;  %v693_v28 = vpop.f32.mrb[91].mxu0 }
 0x1cd   :  { %v3045_v58 = vadd.f32 %v2945_v11, %v692_v36 }
 0x1ce   :  { %v761_v32 = vpop.f32.mrb[0].mxu0 }
 0x1cf   :  { %v1909_v33 = vadd.f32 %v2937_v2, %v761_v32  ;;  %v763_v18 = vpop.f32.mrb[1].mxu0 }
 0x1d1   :  { %v990_v62 = vmax.f32 %v1909_v33, 0.0 }
 0x1d2   :  { %v766_v35 = vpop.f32.mrb[2].mxu0 }
 0x1d3   :  { %v1910_v37 = vadd.f32 %v2937_v2, %v766_v35  ;;  %v768_v38 = vpop.f32.mrb[3].mxu0  ;;  %1766 = vmatmul.mubr.msk.f32.vlgmr.msra.gmra.mrb[52].mxu1 %vm261_vm0, %v990_v62 }
 0x1d4   :  { %1260 = vmatprep.mubr.f32.mxu1 %v2024_v55 }
 0x1d5   :  { %v991_v3 = vmax.f32 %v1910_v37, 0.0 }
 0x1d6   :  { %v771_v40 = vpop.f32.mrb[4].mxu0 }
 0x1d7   :  { %v1911_v41 = vadd.f32 %v2937_v2, %v771_v40  ;;  %v773_v42 = vpop.f32.mrb[5].mxu0  ;;  %1767 = vmatmul.mubr.msk.f32.gmra.mrb[54].mxu1 %vm261_vm0, %v991_v3 }
 0x1d8   :  { %1266 = vmatprep.mubr.f32.mxu1 %v2024_v55 }
 0x1d9   :  { %v992_v11 = vmax.f32 %v1911_v41, 0.0 }
 0x1da   :  { %v776_v43 = vpop.f32.mrb[6].mxu0 }
 0x1db   :  { %v1912_v44 = vadd.f32 %v2937_v2, %v776_v43  ;;  %v778_v47 = vpop.f32.mrb[7].mxu0  ;;  %1768 = vmatmul.mubr.msk.f32.gmra.mrb[56].mxu1 %vm261_vm0, %v992_v11 }
 0x1dc   :  { %1272 = vmatprep.mubr.f32.mxu1 %v2024_v55 }
 0x1dd   :  { %v993_v49 = vmax.f32 %v1912_v44, 0.0 }
 0x1de   :  { %v781_v51 = vpop.f32.mrb[8].mxu0 }
 0x1df   :  { %v1913_v54 = vadd.f32 %v2937_v2, %v781_v51  ;;  %v783_v57 = vpop.f32.mrb[9].mxu0  ;;  %1769 = vmatmul.mubr.msk.f32.gmra.mrb[58].mxu1 %vm261_vm0, %v993_v49 }
 0x1e0   :  { %1278 = vmatprep.mubr.f32.mxu1 %v2024_v55 }
 0x1e1   :  { %v994_v60 = vmax.f32 %v1913_v54, 0.0 }
 0x1e2   :  { %v786_v0 = vpop.f32.mrb[10].mxu0 }
 0x1e3   :  { %v1914_v1 = vadd.f32 %v2937_v2, %v786_v0  ;;  %v788_v5 = vpop.f32.mrb[11].mxu0  ;;  %1770 = vmatmul.mubr.msk.f32.gmra.mrb[60].mxu1 %vm261_vm0, %v994_v60 }
 0x1e4   :  { %1284 = vmatprep.mubr.f32.mxu1 %v2024_v55 }
 0x1e5   :  { %v995_v6 = vmax.f32 %v1914_v1, 0.0 }
 0x1e6   :  { %v791_v7 = vpop.f32.mrb[12].mxu0 }
 0x1e7   :  { %v1915_v9 = vadd.f32 %v2937_v2, %v791_v7  ;;  %v793_v13 = vpop.f32.mrb[13].mxu0  ;;  %1771 = vmatmul.mubr.msk.f32.gmra.mrb[62].mxu1 %vm261_vm0, %v995_v6 }
 0x1e8   :  { %1290 = vmatprep.mubr.f32.mxu1 %v2024_v55 }
 0x1e9   :  { %v996_v14 = vmax.f32 %v1915_v9, 0.0 }
 0x1ea   :  { %v796_v15 = vpop.f32.mrb[14].mxu0 }
 0x1eb   :  { %v1916_v17 = vadd.f32 %v2937_v2, %v796_v15  ;;  %v798_v20 = vpop.f32.mrb[15].mxu0  ;;  %1772 = vmatmul.mubr.msk.f32.gmra.mrb[64].mxu1 %vm261_vm0, %v996_v14 }
 0x1ec   :  { %1296 = vmatprep.mubr.f32.mxu1 %v2024_v55 }
 0x1ed   :  { %v997_v22 = vmax.f32 %v1916_v17, 0.0 }
 0x1ee   :  { %v801_v23 = vpop.f32.mrb[16].mxu0 }
 0x1ef   :  { %v1917_v27 = vadd.f32 %v2937_v2, %v801_v23  ;;  %v803_v36 = vpop.f32.mrb[17].mxu0  ;;  %1773 = vmatmul.mubr.msk.f32.gmra.mrb[66].mxu1 %vm261_vm0, %v997_v22 }
 0x1f0   :  { %1302 = vmatprep.mubr.f32.mxu1 %v2024_v55 }
 0x1f1   :  { %v998_v28 = vmax.f32 %v1917_v27, 0.0 }
 0x1f2   :  { %v806_v32 = vpop.f32.mrb[18].mxu0 }
 0x1f3   :  { %v1918_v33 = vadd.f32 %v2937_v2, %v806_v32  ;;  %v808_v18 = vpop.f32.mrb[19].mxu0  ;;  %1774 = vmatmul.mubr.msk.f32.gmra.mrb[68].mxu1 %vm261_vm0, %v998_v28 }
 0x1f4   :  { %1308 = vmatprep.mubr.f32.mxu1 %v2024_v55 }
 0x1f5   :  { %v999_v62 = vmax.f32 %v1918_v33, 0.0 }
 0x1f6   :  { %v811_v35 = vpop.f32.mrb[20].mxu0 }
 0x1f7   :  { %v1919_v37 = vadd.f32 %v2937_v2, %v811_v35  ;;  %v813_v38 = vpop.f32.mrb[21].mxu0  ;;  %1775 = vmatmul.mubr.msk.f32.gmra.mrb[70].mxu1 %vm261_vm0, %v999_v62 }
 0x1f8   :  { %1314 = vmatprep.mubr.f32.mxu1 %v2024_v55 }
 0x1f9   :  { %v1000_v3 = vmax.f32 %v1919_v37, 0.0 }
 0x1fa   :  { %v816_v40 = vpop.f32.mrb[22].mxu0 }
 0x1fb   :  { %v1920_v41 = vadd.f32 %v2937_v2, %v816_v40  ;;  %v818_v42 = vpop.f32.mrb[23].mxu0  ;;  %1776 = vmatmul.mubr.msk.f32.gmra.mrb[72].mxu1 %vm261_vm0, %v1000_v3  ;;  %v1010_v40 = vmax.f32 %v2943_v10, 0.0  ;;  %v1014_v10 = vmax.f32 %v2961_v39, 0.0  ;;  %v1018_v39 = vmax.f32 %v2977_v63, 0.0 }
 0x1fc   :  { %1320 = vmatprep.mubr.f32.mxu1 %v2024_v55  ;;  %v1013_v42 = vmax.f32 %v2957_v29, 0.0  ;;  %v1017_v29 = vmax.f32 %v2973_v61, 0.0  ;;  %v1021_v61 = vmax.f32 %v2989_v12, 0.0  ;;  %v1022_v63 = vmax.f32 %v2993_v16, 0.0 }
 0x1fd   :  { %v1001_v11 = vmax.f32 %v1920_v41, 0.0  ;;  %v1011_v41 = vmax.f32 %v2949_v19, 0.0  ;;  %v1015_v19 = vmax.f32 %v2965_v45, 0.0  ;;  %v1019_v45 = vmax.f32 %v2981_v4, 0.0 }
 0x1fe   :  { %v821_v43 = vpop.f32.mrb[24].mxu0  ;;  %v1023_v4 = vmax.f32 %v2997_v21, 0.0  ;;  %v1025_v12 = vmax.f32 %v3005_v31, 0.0  ;;  %v1026_v16 = vmax.f32 %v3009_v34, 0.0  ;;  %v1027_v21 = vmax.f32 %v3013_v24, 0.0 }
 0x1ff   :  { %v1921_v44 = vadd.f32 %v2937_v2, %v821_v43  ;;  %v823_v47 = vpop.f32.mrb[25].mxu0  ;;  %1777 = vmatmul.mubr.msk.f32.gmra.mrb[74].mxu1 %vm261_vm0, %v1001_v11  ;;  %v1029_v31 = vmax.f32 %v3021_v46, 0.0  ;;  %v1030_v34 = vmax.f32 %v3025_v48, 0.0  ;;  %v1031_v24 = vmax.f32 %v3029_v50, 0.0 }
 0x200   :  { %1326 = vmatprep.mubr.f32.mxu1 %v2024_v55  ;;  %v1033_v46 = vmax.f32 %v3037_v56, 0.0  ;;  %v1034_v48 = vmax.f32 %v3041_v59, 0.0  ;;  %v1035_v50 = vmax.f32 %v3045_v58, 0.0  ;;  %v1040_v56 = vld [vmem:[%s3563_s4] sm:$0x3] }
 0x201   :  { %v1002_v49 = vmax.f32 %v1921_v44, 0.0 }
 0x202   :  { %v826_v51 = vpop.f32.mrb[26].mxu0 }
 0x203   :  { %v1922_v54 = vadd.f32 %v2937_v2, %v826_v51  ;;  %v828_v57 = vpop.f32.mrb[27].mxu0  ;;  %1778 = vmatmul.mubr.msk.f32.gmra.mrb[76].mxu1 %vm261_vm0, %v1002_v49 }
 0x204   :  { %1332 = vmatprep.mubr.f32.mxu1 %v2024_v55 }
 0x205   :  { %v1003_v60 = vmax.f32 %v1922_v54, 0.0 }
 0x206   :  { %v831_v0 = vpop.f32.mrb[28].mxu0 }
 0x207   :  { %v1923_v1 = vadd.f32 %v2937_v2, %v831_v0  ;;  %v833_v5 = vpop.f32.mrb[29].mxu0  ;;  %1779 = vmatmul.mubr.msk.f32.gmra.mrb[78].mxu1 %vm261_vm0, %v1003_v60 }
 0x208   :  { %1338 = vmatprep.mubr.f32.mxu1 %v2024_v55 }
 0x209   :  { %v1004_v6 = vmax.f32 %v1923_v1, 0.0 }
 0x20a   :  { %v836_v7 = vpop.f32.mrb[30].mxu0 }
 0x20b   :  { %v1924_v9 = vadd.f32 %v2937_v2, %v836_v7  ;;  %v838_v13 = vpop.f32.mrb[31].mxu0  ;;  %1780 = vmatmul.mubr.msk.f32.gmra.mrb[80].mxu1 %vm261_vm0, %v1004_v6 }
 0x20c   :  { %1344 = vmatprep.mubr.f32.mxu1 %v2024_v55 }
 0x20d   :  { %v1005_v14 = vmax.f32 %v1924_v9, 0.0 }
 0x20e   :  { %v841_v15 = vpop.f32.mrb[32].mxu0 }
 0x20f   :  { %v1925_v17 = vadd.f32 %v2937_v2, %v841_v15  ;;  %v843_v20 = vpop.f32.mrb[33].mxu0  ;;  %1781 = vmatmul.mubr.msk.f32.gmra.mrb[82].mxu1 %vm261_vm0, %v1005_v14 }
 0x210   :  { %1350 = vmatprep.mubr.f32.mxu1 %v2024_v55 }
 0x211   :  { %v1006_v22 = vmax.f32 %v1925_v17, 0.0 }
 0x212   :  { %v846_v23 = vpop.f32.mrb[34].mxu0 }
 0x213   :  { %v1926_v27 = vadd.f32 %v2937_v2, %v846_v23  ;;  %v848_v36 = vpop.f32.mrb[35].mxu0  ;;  %1782 = vmatmul.mubr.msk.f32.gmra.mrb[84].mxu1 %vm261_vm0, %v1006_v22 }
 0x214   :  { %1356 = vmatprep.mubr.f32.mxu1 %v2024_v55 }
 0x215   :  { %v1007_v28 = vmax.f32 %v1926_v27, 0.0 }
 0x216   :  { %v851_v32 = vpop.f32.mrb[36].mxu0 }
 0x217   :  { %v1927_v33 = vadd.f32 %v2937_v2, %v851_v32  ;;  %v853_v18 = vpop.f32.mrb[37].mxu0  ;;  %1783 = vmatmul.mubr.msk.f32.gmra.mrb[86].mxu1 %vm261_vm0, %v1007_v28 }
 0x218   :  { %1362 = vmatprep.mubr.f32.mxu1 %v2024_v55 }
 0x219   :  { %v1008_v62 = vmax.f32 %v1927_v33, 0.0 }
 0x21a   :  { %v856_v35 = vpop.f32.mrb[38].mxu0 }
 0x21b   :  { %v1928_v37 = vadd.f32 %v2937_v2, %v856_v35  ;;  %v858_v38 = vpop.f32.mrb[39].mxu0  ;;  %1784 = vmatmul.mubr.msk.f32.gmra.mrb[88].mxu1 %vm261_vm0, %v1008_v62  ;;  %v1012_v2 = vmax.f32 %v2953_v25, 0.0  ;;  %v1016_v25 = vmax.f32 %v2969_v52, 0.0  ;;  %v1020_v52 = vmax.f32 %v2985_v8, 0.0 }
 0x21c   :  { %1368 = vmatprep.mubr.f32.mxu1 %v2024_v55  ;;  %v1024_v8 = vmax.f32 %v3001_v26, 0.0  ;;  %v1028_v26 = vmax.f32 %v3017_v30, 0.0  ;;  %v1032_v30 = vmax.f32 %v3033_v53, 0.0  ;;  %v1042_v53 = vlaneseq }
 0x21d   :  { %v1009_v3 = vmax.f32 %v1928_v37, 0.0 }
 0x21e   :  { %v1043_v11 = vshrl.u32 %v1042_v53, 7 }
 0x21f   :  { %1785 = vmatmul.mubr.msk.f32.gmra.mrb[90].mxu1 %vm261_vm0, %v1009_v3 }
 0x220   :  { %1374 = vmatprep.mubr.f32.mxu1 %v2024_v55  ;;  %v1044_v43 = vsub.s32 0, %v1043_v11  ;;  %v1048_v44 = vsub.s32 1, %v1043_v11 }
 0x222   :  { %v3187_v47 = vrot.slane %v1040_v56, %v1044_v43  ;;  %v3189_v49 = vrot.slane %v1040_v56, %v1048_v44 }
 0x223   :  { %1786 = vmatmul.mubr.msk.f32.gmra.mrb[92].mxu1 %vm261_vm0, %v1010_v40 }
 0x224   :  { %1380 = vmatprep.mubr.f32.mxu1 %v2024_v55 }
 0x227   :  { %1787 = vmatmul.mubr.msk.f32.gmra.mrb[94].mxu1 %vm261_vm0, %v1011_v41 }
 0x228   :  { %1386 = vmatprep.mubr.f32.mxu1 %v2024_v55 }
 0x22b   :  { %1788 = vmatmul.mubr.msk.f32.gmra.mrb[96].mxu1 %vm261_vm0, %v1012_v2 }
 0x22c   :  { %1392 = vmatprep.mubr.f32.mxu1 %v2024_v55 }
 0x22f   :  { %1789 = vmatmul.mubr.msk.f32.gmra.mrb[98].mxu1 %vm261_vm0, %v1013_v42 }
 0x230   :  { %1398 = vmatprep.mubr.f32.mxu1 %v2024_v55 }
 0x233   :  { %1790 = vmatmul.mubr.msk.f32.gmra.mrb[100].mxu1 %vm261_vm0, %v1014_v10 }
 0x234   :  { %1404 = vmatprep.mubr.f32.mxu1 %v2024_v55 }
 0x237   :  { %1791 = vmatmul.mubr.msk.f32.gmra.mrb[102].mxu1 %vm261_vm0, %v1015_v19 }
 0x238   :  { %1410 = vmatprep.mubr.f32.mxu1 %v2024_v55 }
 0x23b   :  { %1792 = vmatmul.mubr.msk.f32.gmra.mrb[104].mxu1 %vm261_vm0, %v1016_v25 }
 0x23c   :  { %1416 = vmatprep.mubr.f32.mxu1 %v2024_v55 }
 0x23f   :  { %1793 = vmatmul.mubr.msk.f32.gmra.mrb[106].mxu1 %vm261_vm0, %v1017_v29 }
 0x240   :  { %1422 = vmatprep.mubr.f32.mxu1 %v2024_v55 }
 0x243   :  { %1794 = vmatmul.mubr.msk.f32.gmra.mrb[108].mxu1 %vm261_vm0, %v1018_v39 }
 0x244   :  { %1428 = vmatprep.mubr.f32.mxu1 %v2024_v55 }
 0x247   :  { %1795 = vmatmul.mubr.msk.f32.gmra.mrb[110].mxu1 %vm261_vm0, %v1019_v45 }
 0x248   :  { %1434 = vmatprep.mubr.f32.mxu1 %v2024_v55 }
 0x24b   :  { %1796 = vmatmul.mubr.msk.f32.gmra.mrb[112].mxu1 %vm261_vm0, %v1020_v52 }
 0x24c   :  { %1440 = vmatprep.mubr.f32.mxu1 %v2024_v55 }
 0x24f   :  { %1797 = vmatmul.mubr.msk.f32.gmra.mrb[114].mxu1 %vm261_vm0, %v1021_v61 }
 0x250   :  { %1446 = vmatprep.mubr.f32.mxu1 %v2024_v55 }
 0x253   :  { %1798 = vmatmul.mubr.msk.f32.gmra.mrb[116].mxu1 %vm261_vm0, %v1022_v63 }
 0x254   :  { %1452 = vmatprep.mubr.f32.mxu1 %v2024_v55 }
 0x257   :  { %1799 = vmatmul.mubr.msk.f32.gmra.mrb[118].mxu1 %vm261_vm0, %v1023_v4 }
 0x258   :  { %1458 = vmatprep.mubr.f32.mxu1 %v2024_v55 }
 0x25b   :  { %1800 = vmatmul.mubr.msk.f32.gmra.mrb[120].mxu1 %vm261_vm0, %v1024_v8 }
 0x25c   :  { %1464 = vmatprep.mubr.f32.mxu1 %v2024_v55 }
 0x25f   :  { %1801 = vmatmul.mubr.msk.f32.gmra.mrb[122].mxu1 %vm261_vm0, %v1025_v12 }
 0x260   :  { %1470 = vmatprep.mubr.f32.mxu1 %v2024_v55 }
 0x263   :  { %1802 = vmatmul.mubr.msk.f32.gmra.mrb[124].mxu1 %vm261_vm0, %v1026_v16 }
 0x264   :  { %1476 = vmatprep.mubr.f32.mxu1 %v2024_v55 }
 0x267   :  { %1803 = vmatmul.mubr.msk.f32.gmra.mrb[126].mxu1 %vm261_vm0, %v1027_v21 }
 0x268   :  { %1482 = vmatprep.mubr.f32.mxu1 %v2024_v55 }
 0x26b   :  { %1804 = vmatmul.mubr.msk.f32.gmra.mrb[128].mxu1 %vm261_vm0, %v1028_v26 }
 0x26c   :  { %1488 = vmatprep.mubr.f32.mxu1 %v2024_v55 }
 0x26f   :  { %1805 = vmatmul.mubr.msk.f32.gmra.mrb[130].mxu1 %vm261_vm0, %v1029_v31 }
 0x270   :  { %1494 = vmatprep.mubr.f32.mxu1 %v2024_v55 }
 0x273   :  { %1806 = vmatmul.mubr.msk.f32.gmra.mrb[132].mxu1 %vm261_vm0, %v1030_v34 }
 0x274   :  { %1500 = vmatprep.mubr.f32.mxu1 %v2024_v55 }
 0x277   :  { %1807 = vmatmul.mubr.msk.f32.gmra.mrb[134].mxu1 %vm261_vm0, %v1031_v24 }
 0x278   :  { %1506 = vmatprep.mubr.f32.mxu1 %v2024_v55 }
 0x27b   :  { %1808 = vmatmul.mubr.msk.f32.gmra.mrb[136].mxu1 %vm261_vm0, %v1032_v30 }
 0x27c   :  { %1512 = vmatprep.mubr.f32.mxu1 %v2024_v55 }
 0x27f   :  { %1809 = vmatmul.mubr.msk.f32.gmra.mrb[138].mxu1 %vm261_vm0, %v1033_v46 }
 0x280   :  { %1518 = vmatprep.mubr.f32.mxu1 %v2024_v55 }
 0x283   :  { %1810 = vmatmul.mubr.msk.f32.gmra.mrb[140].mxu1 %vm261_vm0, %v1034_v48 }
 0x284   :  { %1524 = vmatprep.mubr.f32.mxu1 %v2024_v55 }
 0x287   :  { %1811 = vmatmul.mubr.msk.f32.gmra.mrb[142].mxu1 %vm261_vm0, %v1035_v50 }
 0x2a6   :  { %v1256_v59 = vpop.f32.mrb[52].mxu1 }
 0x2a7   :  { %v1257_v51 = vadd.f32 %v1256_v59, %v3187_v47  ;;  %v1258_v55 = vpop.f32.mrb[53].mxu1 }
 0x2a8   :  { %v1259_v58 = vadd.f32 %v1258_v55, %v3189_v49 }
 0x2a9   :  { %v1531_v54 = vmax.f32 %v1257_v51, 0.0 }
 0x2aa   :  { %v1532_v57 = vmax.f32 %v1259_v58, 0.0  ;;  %v1262_v60 = vpop.f32.mrb[54].mxu1 }
 0x2ab   :  { %1623 = vst [vmem:[%s3564_s5] sm:$0xff] %v1531_v54  ;;  %v1263_v0 = vadd.f32 %v1262_v60, %v3187_v47  ;;  %v1264_v1 = vpop.f32.mrb[55].mxu1 }
 0x2ac   :  { %1624 = vst [vmem:[%s3564_s5 + $0x8] sm:$0xff] %v1532_v57  ;;  %v1265_v5 = vadd.f32 %v1264_v1, %v3189_v49 }
 0x2ad   :  { %v1533_v6 = vmax.f32 %v1263_v0, 0.0 }
 0x2ae   :  { %v1534_v7 = vmax.f32 %v1265_v5, 0.0  ;;  %v1268_v9 = vpop.f32.mrb[56].mxu1 }
 0x2af   :  { %1625 = vst [vmem:[%s3564_s5 + $0x10] sm:$0xff] %v1533_v6  ;;  %v1269_v13 = vadd.f32 %v1268_v9, %v3187_v47  ;;  %v1270_v14 = vpop.f32.mrb[57].mxu1 }
 0x2b0   :  { %1626 = vst [vmem:[%s3564_s5 + $0x18] sm:$0xff] %v1534_v7  ;;  %v1271_v15 = vadd.f32 %v1270_v14, %v3189_v49 }
 0x2b1   :  { %v1535_v17 = vmax.f32 %v1269_v13, 0.0 }
 0x2b2   :  { %v1536_v20 = vmax.f32 %v1271_v15, 0.0  ;;  %v1274_v22 = vpop.f32.mrb[58].mxu1 }
 0x2b3   :  { %1627 = vst [vmem:[%s3564_s5 + $0x20] sm:$0xff] %v1535_v17  ;;  %v1275_v23 = vadd.f32 %v1274_v22, %v3187_v47  ;;  %v1276_v27 = vpop.f32.mrb[59].mxu1 }
 0x2b4   :  { %1628 = vst [vmem:[%s3564_s5 + $0x28] sm:$0xff] %v1536_v20  ;;  %v1277_v36 = vadd.f32 %v1276_v27, %v3189_v49 }
 0x2b5   :  { %v1537_v28 = vmax.f32 %v1275_v23, 0.0 }
 0x2b6   :  { %v1538_v32 = vmax.f32 %v1277_v36, 0.0  ;;  %v1280_v33 = vpop.f32.mrb[60].mxu1 }
 0x2b7   :  { %1629 = vst [vmem:[%s3564_s5 + $0x30] sm:$0xff] %v1537_v28  ;;  %v1281_v18 = vadd.f32 %v1280_v33, %v3187_v47  ;;  %v1282_v62 = vpop.f32.mrb[61].mxu1 }
 0x2b8   :  { %1630 = vst [vmem:[%s3564_s5 + $0x38] sm:$0xff] %v1538_v32  ;;  %v1283_v35 = vadd.f32 %v1282_v62, %v3189_v49 }
 0x2b9   :  { %v1539_v37 = vmax.f32 %v1281_v18, 0.0 }
 0x2ba   :  { %v1540_v38 = vmax.f32 %v1283_v35, 0.0  ;;  %v1286_v3 = vpop.f32.mrb[62].mxu1 }
 0x2bb   :  { %1631 = vst [vmem:[%s3564_s5 + $0x40] sm:$0xff] %v1539_v37  ;;  %v1287_v40 = vadd.f32 %v1286_v3, %v3187_v47  ;;  %v1288_v41 = vpop.f32.mrb[63].mxu1 }
 0x2bc   :  { %1632 = vst [vmem:[%s3564_s5 + $0x48] sm:$0xff] %v1540_v38  ;;  %v1289_v2 = vadd.f32 %v1288_v41, %v3189_v49 }
 0x2bd   :  { %v1541_v42 = vmax.f32 %v1287_v40, 0.0 }
 0x2be   :  { %v1542_v10 = vmax.f32 %v1289_v2, 0.0  ;;  %v1292_v19 = vpop.f32.mrb[64].mxu1 }
 0x2bf   :  { %1633 = vst [vmem:[%s3564_s5 + $0x50] sm:$0xff] %v1541_v42  ;;  %v1293_v25 = vadd.f32 %v1292_v19, %v3187_v47  ;;  %v1294_v29 = vpop.f32.mrb[65].mxu1 }
 0x2c0   :  { %1634 = vst [vmem:[%s3564_s5 + $0x58] sm:$0xff] %v1542_v10  ;;  %v1295_v39 = vadd.f32 %v1294_v29, %v3189_v49 }
 0x2c1   :  { %v1543_v45 = vmax.f32 %v1293_v25, 0.0 }
 0x2c2   :  { %v1544_v52 = vmax.f32 %v1295_v39, 0.0  ;;  %v1298_v61 = vpop.f32.mrb[66].mxu1 }
 0x2c3   :  { %1635 = vst [vmem:[%s3564_s5 + $0x60] sm:$0xff] %v1543_v45  ;;  %v1299_v63 = vadd.f32 %v1298_v61, %v3187_v47  ;;  %v1300_v4 = vpop.f32.mrb[67].mxu1 }
 0x2c4   :  { %1636 = vst [vmem:[%s3564_s5 + $0x68] sm:$0xff] %v1544_v52  ;;  %v1301_v8 = vadd.f32 %v1300_v4, %v3189_v49 }
 0x2c5   :  { %v1545_v12 = vmax.f32 %v1299_v63, 0.0 }
 0x2c6   :  { %v1546_v16 = vmax.f32 %v1301_v8, 0.0  ;;  %v1304_v21 = vpop.f32.mrb[68].mxu1 }
 0x2c7   :  { %1637 = vst [vmem:[%s3564_s5 + $0x70] sm:$0xff] %v1545_v12  ;;  %v1305_v26 = vadd.f32 %v1304_v21, %v3187_v47  ;;  %v1306_v31 = vpop.f32.mrb[69].mxu1 }
 0x2c8   :  { %1638 = vst [vmem:[%s3564_s5 + $0x78] sm:$0xff] %v1546_v16  ;;  %v1307_v34 = vadd.f32 %v1306_v31, %v3189_v49 }
 0x2c9   :  { %v1547_v24 = vmax.f32 %v1305_v26, 0.0 }
 0x2ca   :  { %v1548_v30 = vmax.f32 %v1307_v34, 0.0  ;;  %v1310_v46 = vpop.f32.mrb[70].mxu1 }
 0x2cb   :  { %1639 = vst [vmem:[%s3564_s5 + $0x80] sm:$0xff] %v1547_v24  ;;  %v1311_v48 = vadd.f32 %v1310_v46, %v3187_v47  ;;  %v1312_v50 = vpop.f32.mrb[71].mxu1 }
 0x2cc   :  { %1640 = vst [vmem:[%s3564_s5 + $0x88] sm:$0xff] %v1548_v30  ;;  %v1313_v53 = vadd.f32 %v1312_v50, %v3189_v49 }
 0x2cd   :  { %v1549_v11 = vmax.f32 %v1311_v48, 0.0 }
 0x2ce   :  { %v1550_v43 = vmax.f32 %v1313_v53, 0.0  ;;  %v1316_v56 = vpop.f32.mrb[72].mxu1 }
 0x2cf   :  { %1641 = vst [vmem:[%s3564_s5 + $0x90] sm:$0xff] %v1549_v11  ;;  %v1317_v44 = vadd.f32 %v1316_v56, %v3187_v47  ;;  %v1318_v59 = vpop.f32.mrb[73].mxu1 }
 0x2d0   :  { %1642 = vst [vmem:[%s3564_s5 + $0x98] sm:$0xff] %v1550_v43  ;;  %v1319_v51 = vadd.f32 %v1318_v59, %v3189_v49 }
 0x2d1   :  { %v1551_v55 = vmax.f32 %v1317_v44, 0.0 }
 0x2d2   :  { %v1552_v58 = vmax.f32 %v1319_v51, 0.0  ;;  %v1322_v54 = vpop.f32.mrb[74].mxu1 }
 0x2d3   :  { %1643 = vst [vmem:[%s3564_s5 + $0xa0] sm:$0xff] %v1551_v55  ;;  %v1323_v57 = vadd.f32 %v1322_v54, %v3187_v47  ;;  %v1324_v60 = vpop.f32.mrb[75].mxu1 }
 0x2d4   :  { %1644 = vst [vmem:[%s3564_s5 + $0xa8] sm:$0xff] %v1552_v58  ;;  %v1325_v0 = vadd.f32 %v1324_v60, %v3189_v49 }
 0x2d5   :  { %v1553_v1 = vmax.f32 %v1323_v57, 0.0 }
 0x2d6   :  { %v1554_v5 = vmax.f32 %v1325_v0, 0.0  ;;  %v1328_v6 = vpop.f32.mrb[76].mxu1 }
 0x2d7   :  { %1645 = vst [vmem:[%s3564_s5 + $0xb0] sm:$0xff] %v1553_v1  ;;  %v1329_v7 = vadd.f32 %v1328_v6, %v3187_v47  ;;  %v1330_v9 = vpop.f32.mrb[77].mxu1 }
 0x2d8   :  { %1646 = vst [vmem:[%s3564_s5 + $0xb8] sm:$0xff] %v1554_v5  ;;  %v1331_v13 = vadd.f32 %v1330_v9, %v3189_v49 }
 0x2d9   :  { %v1555_v14 = vmax.f32 %v1329_v7, 0.0 }
 0x2da   :  { %v1556_v15 = vmax.f32 %v1331_v13, 0.0  ;;  %v1334_v17 = vpop.f32.mrb[78].mxu1 }
 0x2db   :  { %1647 = vst [vmem:[%s3564_s5 + $0xc0] sm:$0xff] %v1555_v14  ;;  %v1335_v20 = vadd.f32 %v1334_v17, %v3187_v47  ;;  %v1336_v22 = vpop.f32.mrb[79].mxu1 }
 0x2dc   :  { %1648 = vst [vmem:[%s3564_s5 + $0xc8] sm:$0xff] %v1556_v15  ;;  %v1337_v23 = vadd.f32 %v1336_v22, %v3189_v49 }
 0x2dd   :  { %v1557_v27 = vmax.f32 %v1335_v20, 0.0 }
 0x2de   :  { %v1558_v36 = vmax.f32 %v1337_v23, 0.0  ;;  %v1340_v28 = vpop.f32.mrb[80].mxu1 }
 0x2df   :  { %1649 = vst [vmem:[%s3564_s5 + $0xd0] sm:$0xff] %v1557_v27  ;;  %v1341_v32 = vadd.f32 %v1340_v28, %v3187_v47  ;;  %v1342_v33 = vpop.f32.mrb[81].mxu1 }
 0x2e0   :  { %1650 = vst [vmem:[%s3564_s5 + $0xd8] sm:$0xff] %v1558_v36  ;;  %v1343_v18 = vadd.f32 %v1342_v33, %v3189_v49 }
 0x2e1   :  { %v1559_v62 = vmax.f32 %v1341_v32, 0.0 }
 0x2e2   :  { %v1560_v35 = vmax.f32 %v1343_v18, 0.0  ;;  %v1346_v37 = vpop.f32.mrb[82].mxu1 }
 0x2e3   :  { %1651 = vst [vmem:[%s3564_s5 + $0xe0] sm:$0xff] %v1559_v62  ;;  %v1347_v38 = vadd.f32 %v1346_v37, %v3187_v47  ;;  %v1348_v3 = vpop.f32.mrb[83].mxu1 }
 0x2e4   :  { %1652 = vst [vmem:[%s3564_s5 + $0xe8] sm:$0xff] %v1560_v35  ;;  %v1349_v40 = vadd.f32 %v1348_v3, %v3189_v49 }
 0x2e5   :  { %v1561_v41 = vmax.f32 %v1347_v38, 0.0 }
 0x2e6   :  { %v1562_v2 = vmax.f32 %v1349_v40, 0.0  ;;  %v1352_v42 = vpop.f32.mrb[84].mxu1 }
 0x2e7   :  { %1653 = vst [vmem:[%s3564_s5 + $0xf0] sm:$0xff] %v1561_v41  ;;  %v1353_v10 = vadd.f32 %v1352_v42, %v3187_v47  ;;  %v1354_v19 = vpop.f32.mrb[85].mxu1 }
 0x2e8   :  { %1654 = vst [vmem:[%s3564_s5 + $0xf8] sm:$0xff] %v1562_v2  ;;  %v1355_v25 = vadd.f32 %v1354_v19, %v3189_v49 }
 0x2e9   :  { %v1563_v29 = vmax.f32 %v1353_v10, 0.0 }
 0x2ea   :  { %v1564_v39 = vmax.f32 %v1355_v25, 0.0  ;;  %v1358_v45 = vpop.f32.mrb[86].mxu1 }
 0x2eb   :  { %1655 = vst [vmem:[%s3564_s5 + $0x100] sm:$0xff] %v1563_v29  ;;  %v1359_v52 = vadd.f32 %v1358_v45, %v3187_v47  ;;  %v1360_v61 = vpop.f32.mrb[87].mxu1 }
 0x2ec   :  { %1656 = vst [vmem:[%s3564_s5 + $0x108] sm:$0xff] %v1564_v39  ;;  %v1361_v63 = vadd.f32 %v1360_v61, %v3189_v49 }
 0x2ed   :  { %v1565_v4 = vmax.f32 %v1359_v52, 0.0 }
 0x2ee   :  { %v1566_v8 = vmax.f32 %v1361_v63, 0.0  ;;  %v1364_v12 = vpop.f32.mrb[88].mxu1 }
 0x2ef   :  { %1657 = vst [vmem:[%s3564_s5 + $0x110] sm:$0xff] %v1565_v4  ;;  %v1365_v16 = vadd.f32 %v1364_v12, %v3187_v47  ;;  %v1366_v21 = vpop.f32.mrb[89].mxu1 }
 0x2f0   :  { %1658 = vst [vmem:[%s3564_s5 + $0x118] sm:$0xff] %v1566_v8  ;;  %v1367_v26 = vadd.f32 %v1366_v21, %v3189_v49 }
 0x2f1   :  { %v1567_v31 = vmax.f32 %v1365_v16, 0.0 }
 0x2f2   :  { %v1568_v34 = vmax.f32 %v1367_v26, 0.0  ;;  %v1370_v24 = vpop.f32.mrb[90].mxu1 }
 0x2f3   :  { %1659 = vst [vmem:[%s3564_s5 + $0x120] sm:$0xff] %v1567_v31  ;;  %v1371_v30 = vadd.f32 %v1370_v24, %v3187_v47  ;;  %v1372_v46 = vpop.f32.mrb[91].mxu1 }
 0x2f4   :  { %1660 = vst [vmem:[%s3564_s5 + $0x128] sm:$0xff] %v1568_v34  ;;  %v1373_v48 = vadd.f32 %v1372_v46, %v3189_v49 }
 0x2f5   :  { %v1569_v50 = vmax.f32 %v1371_v30, 0.0 }
 0x2f6   :  { %v1570_v53 = vmax.f32 %v1373_v48, 0.0  ;;  %v1376_v11 = vpop.f32.mrb[92].mxu1 }
 0x2f7   :  { %1661 = vst [vmem:[%s3564_s5 + $0x130] sm:$0xff] %v1569_v50  ;;  %v1377_v43 = vadd.f32 %v1376_v11, %v3187_v47  ;;  %v1378_v56 = vpop.f32.mrb[93].mxu1 }
 0x2f8   :  { %1662 = vst [vmem:[%s3564_s5 + $0x138] sm:$0xff] %v1570_v53  ;;  %v1379_v44 = vadd.f32 %v1378_v56, %v3189_v49 }
 0x2f9   :  { %v1571_v59 = vmax.f32 %v1377_v43, 0.0 }
 0x2fa   :  { %v1572_v51 = vmax.f32 %v1379_v44, 0.0  ;;  %v1382_v55 = vpop.f32.mrb[94].mxu1 }
 0x2fb   :  { %1663 = vst [vmem:[%s3564_s5 + $0x140] sm:$0xff] %v1571_v59  ;;  %v1383_v58 = vadd.f32 %v1382_v55, %v3187_v47  ;;  %v1384_v54 = vpop.f32.mrb[95].mxu1 }
 0x2fc   :  { %1664 = vst [vmem:[%s3564_s5 + $0x148] sm:$0xff] %v1572_v51  ;;  %v1385_v57 = vadd.f32 %v1384_v54, %v3189_v49 }
 0x2fd   :  { %v1573_v60 = vmax.f32 %v1383_v58, 0.0 }
 0x2fe   :  { %v1574_v0 = vmax.f32 %v1385_v57, 0.0  ;;  %v1388_v1 = vpop.f32.mrb[96].mxu1 }
 0x2ff   :  { %1665 = vst [vmem:[%s3564_s5 + $0x150] sm:$0xff] %v1573_v60  ;;  %v1389_v5 = vadd.f32 %v1388_v1, %v3187_v47  ;;  %v1390_v6 = vpop.f32.mrb[97].mxu1 }
 0x300   :  { %1666 = vst [vmem:[%s3564_s5 + $0x158] sm:$0xff] %v1574_v0  ;;  %v1391_v7 = vadd.f32 %v1390_v6, %v3189_v49 }
 0x301   :  { %v1575_v9 = vmax.f32 %v1389_v5, 0.0 }
 0x302   :  { %v1576_v13 = vmax.f32 %v1391_v7, 0.0  ;;  %v1394_v14 = vpop.f32.mrb[98].mxu1 }
 0x303   :  { %1667 = vst [vmem:[%s3564_s5 + $0x160] sm:$0xff] %v1575_v9  ;;  %v1395_v15 = vadd.f32 %v1394_v14, %v3187_v47  ;;  %v1396_v17 = vpop.f32.mrb[99].mxu1 }
 0x304   :  { %1668 = vst [vmem:[%s3564_s5 + $0x168] sm:$0xff] %v1576_v13  ;;  %v1397_v20 = vadd.f32 %v1396_v17, %v3189_v49 }
 0x305   :  { %v1577_v22 = vmax.f32 %v1395_v15, 0.0 }
 0x306   :  { %v1578_v23 = vmax.f32 %v1397_v20, 0.0  ;;  %v1400_v27 = vpop.f32.mrb[100].mxu1 }
 0x307   :  { %1669 = vst [vmem:[%s3564_s5 + $0x170] sm:$0xff] %v1577_v22  ;;  %v1401_v36 = vadd.f32 %v1400_v27, %v3187_v47  ;;  %v1402_v28 = vpop.f32.mrb[101].mxu1 }
 0x308   :  { %1670 = vst [vmem:[%s3564_s5 + $0x178] sm:$0xff] %v1578_v23  ;;  %v1403_v32 = vadd.f32 %v1402_v28, %v3189_v49 }
 0x309   :  { %v1579_v33 = vmax.f32 %v1401_v36, 0.0 }
 0x30a   :  { %v1580_v18 = vmax.f32 %v1403_v32, 0.0  ;;  %v1406_v62 = vpop.f32.mrb[102].mxu1 }
 0x30b   :  { %1671 = vst [vmem:[%s3564_s5 + $0x180] sm:$0xff] %v1579_v33  ;;  %v1407_v35 = vadd.f32 %v1406_v62, %v3187_v47  ;;  %v1408_v37 = vpop.f32.mrb[103].mxu1 }
 0x30c   :  { %1672 = vst [vmem:[%s3564_s5 + $0x188] sm:$0xff] %v1580_v18  ;;  %v1409_v38 = vadd.f32 %v1408_v37, %v3189_v49 }
 0x30d   :  { %v1581_v3 = vmax.f32 %v1407_v35, 0.0 }
 0x30e   :  { %v1582_v40 = vmax.f32 %v1409_v38, 0.0  ;;  %v1412_v41 = vpop.f32.mrb[104].mxu1 }
 0x30f   :  { %1673 = vst [vmem:[%s3564_s5 + $0x190] sm:$0xff] %v1581_v3  ;;  %v1413_v2 = vadd.f32 %v1412_v41, %v3187_v47  ;;  %v1414_v42 = vpop.f32.mrb[105].mxu1 }
 0x310   :  { %1674 = vst [vmem:[%s3564_s5 + $0x198] sm:$0xff] %v1582_v40  ;;  %v1415_v10 = vadd.f32 %v1414_v42, %v3189_v49 }
 0x311   :  { %v1583_v19 = vmax.f32 %v1413_v2, 0.0 }
 0x312   :  { %v1584_v25 = vmax.f32 %v1415_v10, 0.0  ;;  %v1418_v29 = vpop.f32.mrb[106].mxu1 }
 0x313   :  { %1675 = vst [vmem:[%s3564_s5 + $0x1a0] sm:$0xff] %v1583_v19  ;;  %v1419_v39 = vadd.f32 %v1418_v29, %v3187_v47  ;;  %v1420_v45 = vpop.f32.mrb[107].mxu1 }
 0x314   :  { %1676 = vst [vmem:[%s3564_s5 + $0x1a8] sm:$0xff] %v1584_v25  ;;  %v1421_v52 = vadd.f32 %v1420_v45, %v3189_v49 }
 0x315   :  { %v1585_v61 = vmax.f32 %v1419_v39, 0.0 }
 0x316   :  { %v1586_v63 = vmax.f32 %v1421_v52, 0.0  ;;  %v1424_v4 = vpop.f32.mrb[108].mxu1 }
 0x317   :  { %1677 = vst [vmem:[%s3564_s5 + $0x1b0] sm:$0xff] %v1585_v61  ;;  %v1425_v8 = vadd.f32 %v1424_v4, %v3187_v47  ;;  %v1426_v12 = vpop.f32.mrb[109].mxu1 }
 0x318   :  { %1678 = vst [vmem:[%s3564_s5 + $0x1b8] sm:$0xff] %v1586_v63  ;;  %v1427_v16 = vadd.f32 %v1426_v12, %v3189_v49 }
 0x319   :  { %v1587_v21 = vmax.f32 %v1425_v8, 0.0 }
 0x31a   :  { %v1588_v26 = vmax.f32 %v1427_v16, 0.0  ;;  %v1430_v31 = vpop.f32.mrb[110].mxu1 }
 0x31b   :  { %1679 = vst [vmem:[%s3564_s5 + $0x1c0] sm:$0xff] %v1587_v21  ;;  %v1431_v34 = vadd.f32 %v1430_v31, %v3187_v47  ;;  %v1432_v24 = vpop.f32.mrb[111].mxu1 }
 0x31c   :  { %1680 = vst [vmem:[%s3564_s5 + $0x1c8] sm:$0xff] %v1588_v26  ;;  %v1433_v30 = vadd.f32 %v1432_v24, %v3189_v49 }
 0x31d   :  { %v1589_v46 = vmax.f32 %v1431_v34, 0.0 }
 0x31e   :  { %v1590_v48 = vmax.f32 %v1433_v30, 0.0  ;;  %v1436_v50 = vpop.f32.mrb[112].mxu1 }
 0x31f   :  { %1681 = vst [vmem:[%s3564_s5 + $0x1d0] sm:$0xff] %v1589_v46  ;;  %v1437_v53 = vadd.f32 %v1436_v50, %v3187_v47  ;;  %v1438_v11 = vpop.f32.mrb[113].mxu1 }
 0x320   :  { %1682 = vst [vmem:[%s3564_s5 + $0x1d8] sm:$0xff] %v1590_v48  ;;  %v1439_v43 = vadd.f32 %v1438_v11, %v3189_v49 }
 0x321   :  { %v1591_v56 = vmax.f32 %v1437_v53, 0.0 }
 0x322   :  { %v1592_v44 = vmax.f32 %v1439_v43, 0.0  ;;  %v1442_v59 = vpop.f32.mrb[114].mxu1 }
 0x323   :  { %1683 = vst [vmem:[%s3564_s5 + $0x1e0] sm:$0xff] %v1591_v56  ;;  %v1443_v51 = vadd.f32 %v1442_v59, %v3187_v47  ;;  %v1444_v55 = vpop.f32.mrb[115].mxu1 }
 0x324   :  { %1684 = vst [vmem:[%s3564_s5 + $0x1e8] sm:$0xff] %v1592_v44  ;;  %v1445_v58 = vadd.f32 %v1444_v55, %v3189_v49 }
 0x325   :  { %v1593_v54 = vmax.f32 %v1443_v51, 0.0 }
 0x326   :  { %v1594_v57 = vmax.f32 %v1445_v58, 0.0  ;;  %v1448_v60 = vpop.f32.mrb[116].mxu1 }
 0x327   :  { %1685 = vst [vmem:[%s3564_s5 + $0x1f0] sm:$0xff] %v1593_v54  ;;  %v1449_v0 = vadd.f32 %v1448_v60, %v3187_v47  ;;  %v1450_v1 = vpop.f32.mrb[117].mxu1 }
 0x328   :  { %1686 = vst [vmem:[%s3564_s5 + $0x1f8] sm:$0xff] %v1594_v57  ;;  %v1451_v5 = vadd.f32 %v1450_v1, %v3189_v49 }
 0x329   :  { %v1595_v6 = vmax.f32 %v1449_v0, 0.0 }
 0x32a   :  { %v1596_v7 = vmax.f32 %v1451_v5, 0.0  ;;  %v1454_v9 = vpop.f32.mrb[118].mxu1 }
 0x32b   :  { %1687 = vst [vmem:[%s3564_s5 + $0x200] sm:$0xff] %v1595_v6  ;;  %v1455_v13 = vadd.f32 %v1454_v9, %v3187_v47  ;;  %v1456_v14 = vpop.f32.mrb[119].mxu1 }
 0x32c   :  { %1688 = vst [vmem:[%s3564_s5 + $0x208] sm:$0xff] %v1596_v7  ;;  %v1457_v15 = vadd.f32 %v1456_v14, %v3189_v49 }
 0x32d   :  { %v1597_v17 = vmax.f32 %v1455_v13, 0.0 }
 0x32e   :  { %v1598_v20 = vmax.f32 %v1457_v15, 0.0  ;;  %v1460_v22 = vpop.f32.mrb[120].mxu1 }
 0x32f   :  { %1689 = vst [vmem:[%s3564_s5 + $0x210] sm:$0xff] %v1597_v17  ;;  %v1461_v23 = vadd.f32 %v1460_v22, %v3187_v47  ;;  %v1462_v27 = vpop.f32.mrb[121].mxu1 }
 0x330   :  { %1690 = vst [vmem:[%s3564_s5 + $0x218] sm:$0xff] %v1598_v20  ;;  %v1463_v36 = vadd.f32 %v1462_v27, %v3189_v49 }
 0x331   :  { %v1599_v28 = vmax.f32 %v1461_v23, 0.0 }
 0x332   :  { %v1600_v32 = vmax.f32 %v1463_v36, 0.0  ;;  %v1466_v33 = vpop.f32.mrb[122].mxu1 }
 0x333   :  { %1691 = vst [vmem:[%s3564_s5 + $0x220] sm:$0xff] %v1599_v28  ;;  %v1467_v18 = vadd.f32 %v1466_v33, %v3187_v47  ;;  %v1468_v62 = vpop.f32.mrb[123].mxu1 }
 0x334   :  { %1692 = vst [vmem:[%s3564_s5 + $0x228] sm:$0xff] %v1600_v32  ;;  %v1469_v35 = vadd.f32 %v1468_v62, %v3189_v49 }
 0x335   :  { %v1601_v37 = vmax.f32 %v1467_v18, 0.0 }
 0x336   :  { %v1602_v38 = vmax.f32 %v1469_v35, 0.0  ;;  %v1472_v3 = vpop.f32.mrb[124].mxu1 }
 0x337   :  { %1693 = vst [vmem:[%s3564_s5 + $0x230] sm:$0xff] %v1601_v37  ;;  %v1473_v40 = vadd.f32 %v1472_v3, %v3187_v47  ;;  %v1474_v41 = vpop.f32.mrb[125].mxu1 }
 0x338   :  { %1694 = vst [vmem:[%s3564_s5 + $0x238] sm:$0xff] %v1602_v38  ;;  %v1475_v2 = vadd.f32 %v1474_v41, %v3189_v49 }
 0x339   :  { %v1603_v42 = vmax.f32 %v1473_v40, 0.0 }
 0x33a   :  { %v1604_v10 = vmax.f32 %v1475_v2, 0.0  ;;  %v1478_v19 = vpop.f32.mrb[126].mxu1 }
 0x33b   :  { %1695 = vst [vmem:[%s3564_s5 + $0x240] sm:$0xff] %v1603_v42  ;;  %v1479_v25 = vadd.f32 %v1478_v19, %v3187_v47  ;;  %v1480_v29 = vpop.f32.mrb[127].mxu1 }
 0x33c   :  { %1696 = vst [vmem:[%s3564_s5 + $0x248] sm:$0xff] %v1604_v10  ;;  %v1481_v39 = vadd.f32 %v1480_v29, %v3189_v49 }
 0x33d   :  { %v1605_v45 = vmax.f32 %v1479_v25, 0.0 }
 0x33e   :  { %v1606_v52 = vmax.f32 %v1481_v39, 0.0  ;;  %v1484_v61 = vpop.f32.mrb[128].mxu1 }
 0x33f   :  { %1697 = vst [vmem:[%s3564_s5 + $0x250] sm:$0xff] %v1605_v45  ;;  %v1485_v63 = vadd.f32 %v1484_v61, %v3187_v47  ;;  %v1486_v4 = vpop.f32.mrb[129].mxu1 }
 0x340   :  { %1698 = vst [vmem:[%s3564_s5 + $0x258] sm:$0xff] %v1606_v52  ;;  %v1487_v8 = vadd.f32 %v1486_v4, %v3189_v49 }
 0x341   :  { %v1607_v12 = vmax.f32 %v1485_v63, 0.0 }
 0x342   :  { %v1608_v16 = vmax.f32 %v1487_v8, 0.0  ;;  %v1490_v21 = vpop.f32.mrb[130].mxu1 }
 0x343   :  { %1699 = vst [vmem:[%s3564_s5 + $0x260] sm:$0xff] %v1607_v12  ;;  %v1491_v26 = vadd.f32 %v1490_v21, %v3187_v47  ;;  %v1492_v31 = vpop.f32.mrb[131].mxu1 }
 0x344   :  { %1700 = vst [vmem:[%s3564_s5 + $0x268] sm:$0xff] %v1608_v16  ;;  %v1493_v34 = vadd.f32 %v1492_v31, %v3189_v49 }
 0x345   :  { %v1609_v24 = vmax.f32 %v1491_v26, 0.0 }
 0x346   :  { %v1610_v30 = vmax.f32 %v1493_v34, 0.0  ;;  %v1496_v46 = vpop.f32.mrb[132].mxu1 }
 0x347   :  { %1701 = vst [vmem:[%s3564_s5 + $0x270] sm:$0xff] %v1609_v24  ;;  %v1497_v48 = vadd.f32 %v1496_v46, %v3187_v47  ;;  %v1498_v50 = vpop.f32.mrb[133].mxu1 }
 0x348   :  { %1702 = vst [vmem:[%s3564_s5 + $0x278] sm:$0xff] %v1610_v30  ;;  %v1499_v53 = vadd.f32 %v1498_v50, %v3189_v49 }
 0x349   :  { %v1611_v11 = vmax.f32 %v1497_v48, 0.0 }
 0x34a   :  { %v1612_v43 = vmax.f32 %v1499_v53, 0.0  ;;  %v1502_v56 = vpop.f32.mrb[134].mxu1 }
 0x34b   :  { %1703 = vst [vmem:[%s3564_s5 + $0x280] sm:$0xff] %v1611_v11  ;;  %v1503_v44 = vadd.f32 %v1502_v56, %v3187_v47  ;;  %v1504_v59 = vpop.f32.mrb[135].mxu1 }
 0x34c   :  { %1704 = vst [vmem:[%s3564_s5 + $0x288] sm:$0xff] %v1612_v43  ;;  %v1505_v51 = vadd.f32 %v1504_v59, %v3189_v49 }
 0x34d   :  { %v1613_v55 = vmax.f32 %v1503_v44, 0.0 }
 0x34e   :  { %v1614_v58 = vmax.f32 %v1505_v51, 0.0  ;;  %v1508_v54 = vpop.f32.mrb[136].mxu1 }
 0x34f   :  { %1705 = vst [vmem:[%s3564_s5 + $0x290] sm:$0xff] %v1613_v55  ;;  %v1509_v57 = vadd.f32 %v1508_v54, %v3187_v47  ;;  %v1510_v60 = vpop.f32.mrb[137].mxu1 }
 0x350   :  { %1706 = vst [vmem:[%s3564_s5 + $0x298] sm:$0xff] %v1614_v58  ;;  %v1511_v0 = vadd.f32 %v1510_v60, %v3189_v49 }
 0x351   :  { %v1615_v1 = vmax.f32 %v1509_v57, 0.0 }
 0x352   :  { %v1616_v5 = vmax.f32 %v1511_v0, 0.0  ;;  %v1514_v6 = vpop.f32.mrb[138].mxu1 }
 0x353   :  { %1707 = vst [vmem:[%s3564_s5 + $0x2a0] sm:$0xff] %v1615_v1  ;;  %v1515_v7 = vadd.f32 %v1514_v6, %v3187_v47  ;;  %v1516_v9 = vpop.f32.mrb[139].mxu1 }
 0x354   :  { %1708 = vst [vmem:[%s3564_s5 + $0x2a8] sm:$0xff] %v1616_v5  ;;  %v1517_v13 = vadd.f32 %v1516_v9, %v3189_v49 }
 0x355   :  { %v1617_v14 = vmax.f32 %v1515_v7, 0.0 }
 0x356   :  { %v1618_v15 = vmax.f32 %v1517_v13, 0.0  ;;  %v1520_v17 = vpop.f32.mrb[140].mxu1 }
 0x357   :  { %1709 = vst [vmem:[%s3564_s5 + $0x2b0] sm:$0xff] %v1617_v14  ;;  %v1521_v20 = vadd.f32 %v1520_v17, %v3187_v47  ;;  %v1522_v22 = vpop.f32.mrb[141].mxu1 }
 0x358   :  { %1710 = vst [vmem:[%s3564_s5 + $0x2b8] sm:$0xff] %v1618_v15  ;;  %v1523_v23 = vadd.f32 %v1522_v22, %v3189_v49 }
 0x359   :  { %v1619_v27 = vmax.f32 %v1521_v20, 0.0 }
 0x35a   :  { %v1620_v36 = vmax.f32 %v1523_v23, 0.0  ;;  %v1526_v28 = vpop.f32.mrb[142].mxu1 }
 0x35b   :  { %1711 = vst [vmem:[%s3564_s5 + $0x2c0] sm:$0xff] %v1619_v27  ;;  %v1527_v32 = vadd.f32 %v1526_v28, %v3187_v47  ;;  %v1528_v33 = vpop.f32.mrb[143].mxu1 }
 0x35c   :  { %1712 = vst [vmem:[%s3564_s5 + $0x2c8] sm:$0xff] %v1620_v36  ;;  %v1529_v18 = vadd.f32 %v1528_v33, %v3189_v49 }
 0x35d   :  { %v1621_v62 = vmax.f32 %v1527_v32, 0.0 }
 0x35e   :  { %v1622_v35 = vmax.f32 %v1529_v18, 0.0 }
 0x35f   :  { %1713 = vst [vmem:[%s3564_s5 + $0x2d0] sm:$0x1] %v1621_v62 }
 0x360   :  { %1714 = vst [vmem:[%s3564_s5 + $0x2d8] sm:$0x1] %v1622_v35 }

</bundles_post_ra>
